<compile_context>
chip_gen: v5e
topology: v5e:2x2
jax: 0.10.0
libtpu: 0.0.40
codegen_flags: <defaults>
</compile_context>

<pallas_src>
import jax
import jax.numpy as jnp
from jax.experimental import pallas as pl
from jax.experimental.pallas import tpu as pltpu


# ----------------------------------------------------------------------------
# Fused Pallas kernel: wavefronted LSTM layers + analytically-folded head
# ----------------------------------------------------------------------------
def make_fused_kernel(layer_dim, seq_len, batch, hidden_dim):
    L, T, B, H = layer_dim, seq_len, batch, hidden_dim

    def kernel(*refs):
        x_ref = refs[0]                       # (T*B, Din)  bf16, time-major flattened
        layer_refs = refs[1:1 + 3 * L]        # per layer: wih(bf16), whh(bf16), b(f32)
        scale_ref = refs[1 + 3 * L]           # (1, 4H) f32  [0.5,0.5,1,0.5] per gate
        shift_ref = refs[2 + 3 * L]           # (1, 4H) f32  [0.5,0.5,0,0.5] per gate
        w_head_ref = refs[3 + 3 * L]          # (H, O) bf16  folded Ws^3 @ Wfc
        b_head_ref = refs[4 + 3 * L]          # (1, O) f32   folded bias
        out_ref = refs[5 + 3 * L]             # (B, O)
        hn_ref = refs[6 + 3 * L]              # (L, B, H)
        cn_ref = refs[7 + 3 * L]              # (L, B, H)

        # Hoist all weight/constant loads once; they stay resident across the
        # statically unrolled wavefront (a handful of vregs total).
        wih = [layer_refs[3 * l][...] for l in range(L)]
        whh = [layer_refs[3 * l + 1][...] for l in range(L)]
        bias = [layer_refs[3 * l + 2][...] for l in range(L)]
        scale = scale_ref[...]
        shift = shift_ref[...]

        # Hoisted layer-0 input projection: one (T*B, Din) x (Din, 4H) MXU pass.
        # gx0 is (64, 128) f32 = 8 full (8,128) tiles; per-step slices below are
        # static, sublane-aligned, copy-free.
        gx0 = jnp.dot(x_ref[...], wih[0], preferred_element_type=jnp.float32) + bias[0]

        def cell(g, c):
            # g holds [i|f|g|o] pre-activations with i/f/o columns pre-scaled by 0.5,
            # so one tanh EUP push + lane-constant affine yields sigmoid(i/f/o), tanh(g).
            a = jnp.tanh(g) * scale + shift
            i_g = a[:, 0 * H:1 * H]
            f_g = a[:, 1 * H:2 * H]
            g_g = a[:, 2 * H:3 * H]
            o_g = a[:, 3 * H:4 * H]
            c_new = f_g * c + i_g * g_g
            h_new = o_g * jnp.tanh(c_new)
            return h_new, c_new

        h = [jnp.zeros((B, H), jnp.float32) for _ in range(L)]
        c = [jnp.zeros((B, H), jnp.float32) for _ in range(L)]

        # Wavefront: macro-step s runs layer l at timestep t = s - l.  Layer l reads
        # layer l-1's h produced in the previous macro-step (same timestep t), so the
        # old-list/new-list swap keeps the dataflow correct under the static unroll.
        for s in range(T + L - 1):
            new_h = list(h)
            new_c = list(c)
            for l in range(L):
                t = s - l
                if not (0 <= t < T):
                    continue
                if l == 0:
                    g = gx0[t * B:(t + 1) * B, :]
                else:
                    # Per-step input projection for layer l (independent MXU push
                    # issued in the same macro-step as layer 0's recurrence matmul).
                    g = jnp.dot(h[l - 1].astype(jnp.bfloat16), wih[l],
                                preferred_element_type=jnp.float32) + bias[l]
                g = g + jnp.dot(h[l].astype(jnp.bfloat16), whh[l],
                                preferred_element_type=jnp.float32)
                new_h[l], new_c[l] = cell(g, c[l])
            h, c = new_h, new_c

        for l in range(L):
            hn_ref[l] = h[l]
            cn_ref[l] = c[l]

        # TODO(synk): nn.Dropout is identity at inference; LeakyReLU is assigned in
        # forward() but never applied -- faithfully omitted.
        # Head: smoothing^3 + fc folded analytically into a single matmul + bias.
        out_ref[...] = (
            jnp.dot(h[L - 1].astype(jnp.bfloat16), w_head_ref[...],
                    preferred_element_type=jnp.float32)
            + b_head_ref[...]
        )

    return kernel


# ----------------------------------------------------------------------------
# Wrapper
# ----------------------------------------------------------------------------
@jax.jit
def lstm_model_forward(x, params):
    """x: (batch, seq, input_dim). Returns (out, hn, cn) matching the PyTorch module."""
    layer_dim = len(params["lstm"])
    B, T, Din = x.shape
    H = params["lstm"][0][1].shape[0]          # whh is (H, 4H)
    O = params["w_head"].shape[1]

    # Time-major, flattened to (T*B, Din): every timestep is a static sublane-aligned
    # row slice in the kernel.  Cast to bf16 for the MXU (accumulation stays f32).
    x2d = jnp.transpose(x, (1, 0, 2)).reshape(T * B, Din).astype(jnp.bfloat16)

    flat = [x2d]
    for l in range(layer_dim):
        flat.extend(params["lstm"][l])
    flat.extend([params["gate_scale"], params["gate_shift"],
                 params["w_head"], params["b_head"]])

    vmem = pl.BlockSpec(memory_space=pltpu.MemorySpace.VMEM)
    out, hn, cn = pl.pallas_call(
        make_fused_kernel(layer_dim, T, B, H),
        out_shape=[
            jax.ShapeDtypeStruct((B, O), jnp.float32),
            jax.ShapeDtypeStruct((layer_dim, B, H), jnp.float32),
            jax.ShapeDtypeStruct((layer_dim, B, H), jnp.float32),
        ],
        in_specs=[vmem] * len(flat),
        out_specs=[vmem] * 3,
        # Note: at these shapes (~100 KiB resident) no vmem_limit_bytes override or
        # T-chunked pipeline is needed on any generation (v5e/v6e/v7x); if T*B grows,
        # chunk the hoisted projection over T and set vmem_limit_bytes accordingly.
    )(*flat)
    return out, hn, cn


# ----------------------------------------------------------------------------
# Deterministic parameter init (PyTorch-style uniform(-1/sqrt(H), 1/sqrt(H))),
# with kernel-side prefolds:
#   * 0.5 pre-scale on i/f/o columns of W_ih/W_hh/b (sigmoid-via-tanh trick)
#   * matmul weights cast to bf16 (0.5 scale is exact in bf16); biases stay f32
#   * head weights folded: W_head = Ws^T Ws^T Ws^T Wfc^T, matching effective bias
#   * gate scale/shift lane-constants precomputed host-side
# ----------------------------------------------------------------------------
def init_params(key, input_dim, hidden_dim, layer_dim, output_dim):
    H = hidden_dim
    k = 1.0 / jnp.sqrt(jnp.float32(H))

    # PyTorch gate column order: [i | f | g | o]; halve i, f, o only.
    col_scale = jnp.concatenate([
        jnp.full((H,), 0.5, jnp.float32),
        jnp.full((H,), 0.5, jnp.float32),
        jnp.ones((H,), jnp.float32),
        jnp.full((H,), 0.5, jnp.float32),
    ])

    params = {"lstm": []}
    raw = {"lstm": []}
    for l in range(layer_dim):
        din = input_dim if l == 0 else H
        key, k1, k2, k3, k4 = jax.random.split(key, 5)
        w_ih = jax.random.uniform(k1, (4 * H, din), jnp.float32, -k, k)
        w_hh = jax.random.uniform(k2, (4 * H, H), jnp.float32, -k, k)
        b_ih = jax.random.uniform(k3, (4 * H,), jnp.float32, -k, k)
        b_hh = jax.random.uniform(k4, (4 * H,), jnp.float32, -k, k)
        raw["lstm"].append((w_ih, w_hh, b_ih, b_hh))
        params["lstm"].append((
            (w_ih.T * col_scale[None, :]).astype(jnp.bfloat16),
            (w_hh.T * col_scale[None, :]).astype(jnp.bfloat16),
            ((b_ih + b_hh) * col_scale).reshape(1, -1),          # f32
        ))

    key, k1, k2, k3, k4 = jax.random.split(key, 5)
    ws = jax.random.uniform(k1, (H, H), jnp.float32, -k, k)
    bs = jax.random.uniform(k2, (H,), jnp.float32, -k, k)
    wfc = jax.random.uniform(k3, (output_dim, H), jnp.float32, -k, k)
    bfc = jax.random.uniform(k4, (output_dim,), jnp.float32, -k, k)
    raw.update(ws=ws, bs=bs, wfc=wfc, bfc=bfc)

    ws_t, wfc_t = ws.T, wfc.T
    w_head = ws_t @ ws_t @ ws_t @ wfc_t                      # (H, O)
    b_eff = bs @ ws_t @ ws_t + bs @ ws_t + bs                # (H,)
    b_head = b_eff @ wfc_t + bfc                             # (O,)

    gate_scale = jnp.concatenate([
        jnp.full((1, H), 0.5, jnp.float32), jnp.full((1, H), 0.5, jnp.float32),
        jnp.ones((1, H), jnp.float32), jnp.full((1, H), 0.5, jnp.float32)], axis=1)
    gate_shift = jnp.concatenate([
        jnp.full((1, H), 0.5, jnp.float32), jnp.full((1, H), 0.5, jnp.float32),
        jnp.zeros((1, H), jnp.float32), jnp.full((1, H), 0.5, jnp.float32)], axis=1)

    params.update(w_head=w_head.astype(jnp.bfloat16),
                  b_head=b_head.reshape(1, -1),
                  gate_scale=gate_scale, gate_shift=gate_shift)
    return params, raw


# ----------------------------------------------------------------------------
# Pure-JAX f32 reference (faithful to the PyTorch module, unfolded)
# ----------------------------------------------------------------------------
def ref_forward(x, raw, hidden_dim, layer_dim):
    B, T, _ = x.shape
    seq = x
    h_fin, c_fin = [], []
    for l in range(layer_dim):
        w_ih, w_hh, b_ih, b_hh = raw["lstm"][l]
        h = jnp.zeros((B, hidden_dim), jnp.float32)
        c = jnp.zeros((B, hidden_dim), jnp.float32)
        hs = []
        for t in range(T):
            g = seq[:, t, :] @ w_ih.T + h @ w_hh.T + b_ih + b_hh
            i_, f_, g_, o_ = jnp.split(g, 4, axis=1)
            c = jax.nn.sigmoid(f_) * c + jax.nn.sigmoid(i_) * jnp.tanh(g_)
            h = jax.nn.sigmoid(o_) * jnp.tanh(c)
            hs.append(h)
        seq = jnp.stack(hs, axis=1)
        h_fin.append(h)
        c_fin.append(c)
    y = seq[:, -1, :]
    for _ in range(3):
        y = y @ raw["ws"].T + raw["bs"]
    y = y @ raw["wfc"].T + raw["bfc"]
    return y, jnp.stack(h_fin), jnp.stack(c_fin)


# ----------------------------------------------------------------------------
if __name__ == "__main__":
    INPUT_DIM, HIDDEN_DIM, LAYER_DIM, OUTPUT_DIM = 16, 32, 2, 4
    BATCH, SEQ = 8, 8

    key = jax.random.PRNGKey(0)
    key, kx, kp = jax.random.split(key, 3)
    x = jax.random.normal(kx, (BATCH, SEQ, INPUT_DIM), jnp.float32)
    params, raw = init_params(kp, INPUT_DIM, HIDDEN_DIM, LAYER_DIM, OUTPUT_DIM)

    out, hn, cn = lstm_model_forward(x, params)
    jax.block_until_ready((out, hn, cn))

    out_r, hn_r, cn_r = ref_forward(x, raw, HIDDEN_DIM, LAYER_DIM)
    assert out.shape == (BATCH, OUTPUT_DIM)
    assert hn.shape == (LAYER_DIM, BATCH, HIDDEN_DIM)
    assert cn.shape == (LAYER_DIM, BATCH, HIDDEN_DIM)
    # bf16 MXU operands (f32 accumulation / f32 state) => slightly looser tolerance.
    assert jnp.allclose(out, out_r, atol=2e-2, rtol=2e-2)
    assert jnp.allclose(hn, hn_r, atol=2e-2, rtol=2e-2)
    assert jnp.allclose(cn, cn_r, atol=2e-2, rtol=2e-2)

    print("KERNEL_OK")
</pallas_src>

<mosaic_0001>
module attributes {stable_mosaic.version = 11 : i64} {
  func.func @kernel(%arg0: memref<64x16xbf16, #tpu.memory_space<vmem>>, %arg1: memref<16x128xbf16, #tpu.memory_space<vmem>>, %arg2: memref<32x128xbf16, #tpu.memory_space<vmem>>, %arg3: memref<1x128xf32, #tpu.memory_space<vmem>>, %arg4: memref<32x128xbf16, #tpu.memory_space<vmem>>, %arg5: memref<32x128xbf16, #tpu.memory_space<vmem>>, %arg6: memref<1x128xf32, #tpu.memory_space<vmem>>, %arg7: memref<1x128xf32, #tpu.memory_space<vmem>>, %arg8: memref<1x128xf32, #tpu.memory_space<vmem>>, %arg9: memref<32x4xbf16, #tpu.memory_space<vmem>>, %arg10: memref<1x4xf32, #tpu.memory_space<vmem>>, %arg11: memref<8x4xf32, #tpu.memory_space<vmem>>, %arg12: memref<2x8x32xf32, #tpu.memory_space<vmem>>, %arg13: memref<2x8x32xf32, #tpu.memory_space<vmem>>) attributes {dimension_semantics = [], scalar_prefetch = 0 : i64, scratch_operands = 0 : i64, tpu.core_type = #tpu.core_type<tc>} {
    %c0 = arith.constant 0 : index
    %c0_0 = arith.constant 0 : index
    %0 = vector.load %arg1[%c0, %c0_0] : memref<16x128xbf16, #tpu.memory_space<vmem>>, vector<16x128xbf16>
    %c0_1 = arith.constant 0 : index
    %c0_2 = arith.constant 0 : index
    %1 = vector.load %arg4[%c0_1, %c0_2] : memref<32x128xbf16, #tpu.memory_space<vmem>>, vector<32x128xbf16>
    %c0_3 = arith.constant 0 : index
    %c0_4 = arith.constant 0 : index
    %2 = vector.load %arg2[%c0_3, %c0_4] : memref<32x128xbf16, #tpu.memory_space<vmem>>, vector<32x128xbf16>
    %c0_5 = arith.constant 0 : index
    %c0_6 = arith.constant 0 : index
    %3 = vector.load %arg5[%c0_5, %c0_6] : memref<32x128xbf16, #tpu.memory_space<vmem>>, vector<32x128xbf16>
    %c0_7 = arith.constant 0 : index
    %c0_8 = arith.constant 0 : index
    %4 = vector.load %arg3[%c0_7, %c0_8] : memref<1x128xf32, #tpu.memory_space<vmem>>, vector<1x128xf32>
    %c0_9 = arith.constant 0 : index
    %c0_10 = arith.constant 0 : index
    %5 = vector.load %arg6[%c0_9, %c0_10] : memref<1x128xf32, #tpu.memory_space<vmem>>, vector<1x128xf32>
    %c0_11 = arith.constant 0 : index
    %c0_12 = arith.constant 0 : index
    %6 = vector.load %arg7[%c0_11, %c0_12] : memref<1x128xf32, #tpu.memory_space<vmem>>, vector<1x128xf32>
    %c0_13 = arith.constant 0 : index
    %c0_14 = arith.constant 0 : index
    %7 = vector.load %arg8[%c0_13, %c0_14] : memref<1x128xf32, #tpu.memory_space<vmem>>, vector<1x128xf32>
    %c0_15 = arith.constant 0 : index
    %c0_16 = arith.constant 0 : index
    %8 = vector.load %arg0[%c0_15, %c0_16] : memref<64x16xbf16, #tpu.memory_space<vmem>>, vector<64x16xbf16>
    %cst = arith.constant dense<0.000000e+00> : vector<64x128xf32>
    %9 = tpu.matmul %8, %0, %cst {dimension_numbers = #tpu.dot_dimension_numbers<[1], [0], [0], [1], [0, 0, 1, 1], [], []>} : vector<64x16xbf16>, vector<16x128xbf16>, vector<64x128xf32> -> vector<64x128xf32>
    %10 = vector.broadcast %4 : vector<1x128xf32> to vector<64x128xf32>
    %11 = arith.addf %9, %10 : vector<64x128xf32>
    %cst_17 = arith.constant 0.000000e+00 : f32
    %12 = vector.broadcast %cst_17 : f32 to vector<8x32xf32>
    %cst_18 = arith.constant 0.000000e+00 : f32
    %13 = vector.broadcast %cst_18 : f32 to vector<8x32xf32>
    %cst_19 = arith.constant 0.000000e+00 : f32
    %14 = vector.broadcast %cst_19 : f32 to vector<8x32xf32>
    %cst_20 = arith.constant 0.000000e+00 : f32
    %15 = vector.broadcast %cst_20 : f32 to vector<8x32xf32>
    %16 = vector.extract_strided_slice %11 {offsets = [0, 0], sizes = [8, 128], strides = [1, 1]} : vector<64x128xf32> to vector<8x128xf32>
    %17 = arith.truncf %12 : vector<8x32xf32> to vector<8x32xbf16>
    %cst_21 = arith.constant dense<0.000000e+00> : vector<8x128xf32>
    %18 = tpu.matmul %17, %2, %cst_21 {dimension_numbers = #tpu.dot_dimension_numbers<[1], [0], [0], [1], [0, 0, 1, 1], [], []>} : vector<8x32xbf16>, vector<32x128xbf16>, vector<8x128xf32> -> vector<8x128xf32>
    %19 = arith.addf %16, %18 : vector<8x128xf32>
    %20 = math.tanh %19 : vector<8x128xf32>
    %21 = vector.broadcast %6 : vector<1x128xf32> to vector<8x128xf32>
    %22 = arith.mulf %20, %21 : vector<8x128xf32>
    %23 = vector.broadcast %7 : vector<1x128xf32> to vector<8x128xf32>
    %24 = arith.addf %22, %23 : vector<8x128xf32>
    %25 = vector.extract_strided_slice %24 {offsets = [0, 0], sizes = [8, 32], strides = [1, 1]} : vector<8x128xf32> to vector<8x32xf32>
    %26 = vector.extract_strided_slice %24 {offsets = [0, 32], sizes = [8, 32], strides = [1, 1]} : vector<8x128xf32> to vector<8x32xf32>
    %27 = vector.extract_strided_slice %24 {offsets = [0, 64], sizes = [8, 32], strides = [1, 1]} : vector<8x128xf32> to vector<8x32xf32>
    %28 = vector.extract_strided_slice %24 {offsets = [0, 96], sizes = [8, 32], strides = [1, 1]} : vector<8x128xf32> to vector<8x32xf32>
    %29 = arith.mulf %26, %14 : vector<8x32xf32>
    %30 = arith.mulf %25, %27 : vector<8x32xf32>
    %31 = arith.addf %29, %30 : vector<8x32xf32>
    %32 = math.tanh %31 : vector<8x32xf32>
    %33 = arith.mulf %28, %32 : vector<8x32xf32>
    %34 = vector.extract_strided_slice %11 {offsets = [8, 0], sizes = [8, 128], strides = [1, 1]} : vector<64x128xf32> to vector<8x128xf32>
    %35 = arith.truncf %33 : vector<8x32xf32> to vector<8x32xbf16>
    %cst_22 = arith.constant dense<0.000000e+00> : vector<8x128xf32>
    %36 = tpu.matmul %35, %2, %cst_22 {dimension_numbers = #tpu.dot_dimension_numbers<[1], [0], [0], [1], [0, 0, 1, 1], [], []>} : vector<8x32xbf16>, vector<32x128xbf16>, vector<8x128xf32> -> vector<8x128xf32>
    %37 = arith.addf %34, %36 : vector<8x128xf32>
    %38 = math.tanh %37 : vector<8x128xf32>
    %39 = vector.broadcast %6 : vector<1x128xf32> to vector<8x128xf32>
    %40 = arith.mulf %38, %39 : vector<8x128xf32>
    %41 = vector.broadcast %7 : vector<1x128xf32> to vector<8x128xf32>
    %42 = arith.addf %40, %41 : vector<8x128xf32>
    %43 = vector.extract_strided_slice %42 {offsets = [0, 0], sizes = [8, 32], strides = [1, 1]} : vector<8x128xf32> to vector<8x32xf32>
    %44 = vector.extract_strided_slice %42 {offsets = [0, 32], sizes = [8, 32], strides = [1, 1]} : vector<8x128xf32> to vector<8x32xf32>
    %45 = vector.extract_strided_slice %42 {offsets = [0, 64], sizes = [8, 32], strides = [1, 1]} : vector<8x128xf32> to vector<8x32xf32>
    %46 = vector.extract_strided_slice %42 {offsets = [0, 96], sizes = [8, 32], strides = [1, 1]} : vector<8x128xf32> to vector<8x32xf32>
    %47 = arith.mulf %44, %31 : vector<8x32xf32>
    %48 = arith.mulf %43, %45 : vector<8x32xf32>
    %49 = arith.addf %47, %48 : vector<8x32xf32>
    %50 = math.tanh %49 : vector<8x32xf32>
    %51 = arith.mulf %46, %50 : vector<8x32xf32>
    %52 = arith.truncf %33 : vector<8x32xf32> to vector<8x32xbf16>
    %cst_23 = arith.constant dense<0.000000e+00> : vector<8x128xf32>
    %53 = tpu.matmul %52, %1, %cst_23 {dimension_numbers = #tpu.dot_dimension_numbers<[1], [0], [0], [1], [0, 0, 1, 1], [], []>} : vector<8x32xbf16>, vector<32x128xbf16>, vector<8x128xf32> -> vector<8x128xf32>
    %54 = vector.broadcast %5 : vector<1x128xf32> to vector<8x128xf32>
    %55 = arith.addf %53, %54 : vector<8x128xf32>
    %56 = arith.truncf %13 : vector<8x32xf32> to vector<8x32xbf16>
    %cst_24 = arith.constant dense<0.000000e+00> : vector<8x128xf32>
    %57 = tpu.matmul %56, %3, %cst_24 {dimension_numbers = #tpu.dot_dimension_numbers<[1], [0], [0], [1], [0, 0, 1, 1], [], []>} : vector<8x32xbf16>, vector<32x128xbf16>, vector<8x128xf32> -> vector<8x128xf32>
    %58 = arith.addf %55, %57 : vector<8x128xf32>
    %59 = math.tanh %58 : vector<8x128xf32>
    %60 = vector.broadcast %6 : vector<1x128xf32> to vector<8x128xf32>
    %61 = arith.mulf %59, %60 : vector<8x128xf32>
    %62 = vector.broadcast %7 : vector<1x128xf32> to vector<8x128xf32>
    %63 = arith.addf %61, %62 : vector<8x128xf32>
    %64 = vector.extract_strided_slice %63 {offsets = [0, 0], sizes = [8, 32], strides = [1, 1]} : vector<8x128xf32> to vector<8x32xf32>
    %65 = vector.extract_strided_slice %63 {offsets = [0, 32], sizes = [8, 32], strides = [1, 1]} : vector<8x128xf32> to vector<8x32xf32>
    %66 = vector.extract_strided_slice %63 {offsets = [0, 64], sizes = [8, 32], strides = [1, 1]} : vector<8x128xf32> to vector<8x32xf32>
    %67 = vector.extract_strided_slice %63 {offsets = [0, 96], sizes = [8, 32], strides = [1, 1]} : vector<8x128xf32> to vector<8x32xf32>
    %68 = arith.mulf %65, %15 : vector<8x32xf32>
    %69 = arith.mulf %64, %66 : vector<8x32xf32>
    %70 = arith.addf %68, %69 : vector<8x32xf32>
    %71 = math.tanh %70 : vector<8x32xf32>
    %72 = arith.mulf %67, %71 : vector<8x32xf32>
    %73 = vector.extract_strided_slice %11 {offsets = [16, 0], sizes = [8, 128], strides = [1, 1]} : vector<64x128xf32> to vector<8x128xf32>
    %74 = arith.truncf %51 : vector<8x32xf32> to vector<8x32xbf16>
    %cst_25 = arith.constant dense<0.000000e+00> : vector<8x128xf32>
    %75 = tpu.matmul %74, %2, %cst_25 {dimension_numbers = #tpu.dot_dimension_numbers<[1], [0], [0], [1], [0, 0, 1, 1], [], []>} : vector<8x32xbf16>, vector<32x128xbf16>, vector<8x128xf32> -> vector<8x128xf32>
    %76 = arith.addf %73, %75 : vector<8x128xf32>
    %77 = math.tanh %76 : vector<8x128xf32>
    %78 = vector.broadcast %6 : vector<1x128xf32> to vector<8x128xf32>
    %79 = arith.mulf %77, %78 : vector<8x128xf32>
    %80 = vector.broadcast %7 : vector<1x128xf32> to vector<8x128xf32>
    %81 = arith.addf %79, %80 : vector<8x128xf32>
    %82 = vector.extract_strided_slice %81 {offsets = [0, 0], sizes = [8, 32], strides = [1, 1]} : vector<8x128xf32> to vector<8x32xf32>
    %83 = vector.extract_strided_slice %81 {offsets = [0, 32], sizes = [8, 32], strides = [1, 1]} : vector<8x128xf32> to vector<8x32xf32>
    %84 = vector.extract_strided_slice %81 {offsets = [0, 64], sizes = [8, 32], strides = [1, 1]} : vector<8x128xf32> to vector<8x32xf32>
    %85 = vector.extract_strided_slice %81 {offsets = [0, 96], sizes = [8, 32], strides = [1, 1]} : vector<8x128xf32> to vector<8x32xf32>
    %86 = arith.mulf %83, %49 : vector<8x32xf32>
    %87 = arith.mulf %82, %84 : vector<8x32xf32>
    %88 = arith.addf %86, %87 : vector<8x32xf32>
    %89 = math.tanh %88 : vector<8x32xf32>
    %90 = arith.mulf %85, %89 : vector<8x32xf32>
    %91 = arith.truncf %51 : vector<8x32xf32> to vector<8x32xbf16>
    %cst_26 = arith.constant dense<0.000000e+00> : vector<8x128xf32>
    %92 = tpu.matmul %91, %1, %cst_26 {dimension_numbers = #tpu.dot_dimension_numbers<[1], [0], [0], [1], [0, 0, 1, 1], [], []>} : vector<8x32xbf16>, vector<32x128xbf16>, vector<8x128xf32> -> vector<8x128xf32>
    %93 = vector.broadcast %5 : vector<1x128xf32> to vector<8x128xf32>
    %94 = arith.addf %92, %93 : vector<8x128xf32>
    %95 = arith.truncf %72 : vector<8x32xf32> to vector<8x32xbf16>
    %cst_27 = arith.constant dense<0.000000e+00> : vector<8x128xf32>
    %96 = tpu.matmul %95, %3, %cst_27 {dimension_numbers = #tpu.dot_dimension_numbers<[1], [0], [0], [1], [0, 0, 1, 1], [], []>} : vector<8x32xbf16>, vector<32x128xbf16>, vector<8x128xf32> -> vector<8x128xf32>
    %97 = arith.addf %94, %96 : vector<8x128xf32>
    %98 = math.tanh %97 : vector<8x128xf32>
    %99 = vector.broadcast %6 : vector<1x128xf32> to vector<8x128xf32>
    %100 = arith.mulf %98, %99 : vector<8x128xf32>
    %101 = vector.broadcast %7 : vector<1x128xf32> to vector<8x128xf32>
    %102 = arith.addf %100, %101 : vector<8x128xf32>
    %103 = vector.extract_strided_slice %102 {offsets = [0, 0], sizes = [8, 32], strides = [1, 1]} : vector<8x128xf32> to vector<8x32xf32>
    %104 = vector.extract_strided_slice %102 {offsets = [0, 32], sizes = [8, 32], strides = [1, 1]} : vector<8x128xf32> to vector<8x32xf32>
    %105 = vector.extract_strided_slice %102 {offsets = [0, 64], sizes = [8, 32], strides = [1, 1]} : vector<8x128xf32> to vector<8x32xf32>
    %106 = vector.extract_strided_slice %102 {offsets = [0, 96], sizes = [8, 32], strides = [1, 1]} : vector<8x128xf32> to vector<8x32xf32>
    %107 = arith.mulf %104, %70 : vector<8x32xf32>
    %108 = arith.mulf %103, %105 : vector<8x32xf32>
    %109 = arith.addf %107, %108 : vector<8x32xf32>
    %110 = math.tanh %109 : vector<8x32xf32>
    %111 = arith.mulf %106, %110 : vector<8x32xf32>
    %112 = vector.extract_strided_slice %11 {offsets = [24, 0], sizes = [8, 128], strides = [1, 1]} : vector<64x128xf32> to vector<8x128xf32>
    %113 = arith.truncf %90 : vector<8x32xf32> to vector<8x32xbf16>
    %cst_28 = arith.constant dense<0.000000e+00> : vector<8x128xf32>
    %114 = tpu.matmul %113, %2, %cst_28 {dimension_numbers = #tpu.dot_dimension_numbers<[1], [0], [0], [1], [0, 0, 1, 1], [], []>} : vector<8x32xbf16>, vector<32x128xbf16>, vector<8x128xf32> -> vector<8x128xf32>
    %115 = arith.addf %112, %114 : vector<8x128xf32>
    %116 = math.tanh %115 : vector<8x128xf32>
    %117 = vector.broadcast %6 : vector<1x128xf32> to vector<8x128xf32>
    %118 = arith.mulf %116, %117 : vector<8x128xf32>
    %119 = vector.broadcast %7 : vector<1x128xf32> to vector<8x128xf32>
    %120 = arith.addf %118, %119 : vector<8x128xf32>
    %121 = vector.extract_strided_slice %120 {offsets = [0, 0], sizes = [8, 32], strides = [1, 1]} : vector<8x128xf32> to vector<8x32xf32>
    %122 = vector.extract_strided_slice %120 {offsets = [0, 32], sizes = [8, 32], strides = [1, 1]} : vector<8x128xf32> to vector<8x32xf32>
    %123 = vector.extract_strided_slice %120 {offsets = [0, 64], sizes = [8, 32], strides = [1, 1]} : vector<8x128xf32> to vector<8x32xf32>
    %124 = vector.extract_strided_slice %120 {offsets = [0, 96], sizes = [8, 32], strides = [1, 1]} : vector<8x128xf32> to vector<8x32xf32>
    %125 = arith.mulf %122, %88 : vector<8x32xf32>
    %126 = arith.mulf %121, %123 : vector<8x32xf32>
    %127 = arith.addf %125, %126 : vector<8x32xf32>
    %128 = math.tanh %127 : vector<8x32xf32>
    %129 = arith.mulf %124, %128 : vector<8x32xf32>
    %130 = arith.truncf %90 : vector<8x32xf32> to vector<8x32xbf16>
    %cst_29 = arith.constant dense<0.000000e+00> : vector<8x128xf32>
    %131 = tpu.matmul %130, %1, %cst_29 {dimension_numbers = #tpu.dot_dimension_numbers<[1], [0], [0], [1], [0, 0, 1, 1], [], []>} : vector<8x32xbf16>, vector<32x128xbf16>, vector<8x128xf32> -> vector<8x128xf32>
    %132 = vector.broadcast %5 : vector<1x128xf32> to vector<8x128xf32>
    %133 = arith.addf %131, %132 : vector<8x128xf32>
    %134 = arith.truncf %111 : vector<8x32xf32> to vector<8x32xbf16>
    %cst_30 = arith.constant dense<0.000000e+00> : vector<8x128xf32>
    %135 = tpu.matmul %134, %3, %cst_30 {dimension_numbers = #tpu.dot_dimension_numbers<[1], [0], [0], [1], [0, 0, 1, 1], [], []>} : vector<8x32xbf16>, vector<32x128xbf16>, vector<8x128xf32> -> vector<8x128xf32>
    %136 = arith.addf %133, %135 : vector<8x128xf32>
    %137 = math.tanh %136 : vector<8x128xf32>
    %138 = vector.broadcast %6 : vector<1x128xf32> to vector<8x128xf32>
    %139 = arith.mulf %137, %138 : vector<8x128xf32>
    %140 = vector.broadcast %7 : vector<1x128xf32> to vector<8x128xf32>
    %141 = arith.addf %139, %140 : vector<8x128xf32>
    %142 = vector.extract_strided_slice %141 {offsets = [0, 0], sizes = [8, 32], strides = [1, 1]} : vector<8x128xf32> to vector<8x32xf32>
    %143 = vector.extract_strided_slice %141 {offsets = [0, 32], sizes = [8, 32], strides = [1, 1]} : vector<8x128xf32> to vector<8x32xf32>
    %144 = vector.extract_strided_slice %141 {offsets = [0, 64], sizes = [8, 32], strides = [1, 1]} : vector<8x128xf32> to vector<8x32xf32>
    %145 = vector.extract_strided_slice %141 {offsets = [0, 96], sizes = [8, 32], strides = [1, 1]} : vector<8x128xf32> to vector<8x32xf32>
    %146 = arith.mulf %143, %109 : vector<8x32xf32>
    %147 = arith.mulf %142, %144 : vector<8x32xf32>
    %148 = arith.addf %146, %147 : vector<8x32xf32>
    %149 = math.tanh %148 : vector<8x32xf32>
    %150 = arith.mulf %145, %149 : vector<8x32xf32>
    %151 = vector.extract_strided_slice %11 {offsets = [32, 0], sizes = [8, 128], strides = [1, 1]} : vector<64x128xf32> to vector<8x128xf32>
    %152 = arith.truncf %129 : vector<8x32xf32> to vector<8x32xbf16>
    %cst_31 = arith.constant dense<0.000000e+00> : vector<8x128xf32>
    %153 = tpu.matmul %152, %2, %cst_31 {dimension_numbers = #tpu.dot_dimension_numbers<[1], [0], [0], [1], [0, 0, 1, 1], [], []>} : vector<8x32xbf16>, vector<32x128xbf16>, vector<8x128xf32> -> vector<8x128xf32>
    %154 = arith.addf %151, %153 : vector<8x128xf32>
    %155 = math.tanh %154 : vector<8x128xf32>
    %156 = vector.broadcast %6 : vector<1x128xf32> to vector<8x128xf32>
    %157 = arith.mulf %155, %156 : vector<8x128xf32>
    %158 = vector.broadcast %7 : vector<1x128xf32> to vector<8x128xf32>
    %159 = arith.addf %157, %158 : vector<8x128xf32>
    %160 = vector.extract_strided_slice %159 {offsets = [0, 0], sizes = [8, 32], strides = [1, 1]} : vector<8x128xf32> to vector<8x32xf32>
    %161 = vector.extract_strided_slice %159 {offsets = [0, 32], sizes = [8, 32], strides = [1, 1]} : vector<8x128xf32> to vector<8x32xf32>
    %162 = vector.extract_strided_slice %159 {offsets = [0, 64], sizes = [8, 32], strides = [1, 1]} : vector<8x128xf32> to vector<8x32xf32>
    %163 = vector.extract_strided_slice %159 {offsets = [0, 96], sizes = [8, 32], strides = [1, 1]} : vector<8x128xf32> to vector<8x32xf32>
    %164 = arith.mulf %161, %127 : vector<8x32xf32>
    %165 = arith.mulf %160, %162 : vector<8x32xf32>
    %166 = arith.addf %164, %165 : vector<8x32xf32>
    %167 = math.tanh %166 : vector<8x32xf32>
    %168 = arith.mulf %163, %167 : vector<8x32xf32>
    %169 = arith.truncf %129 : vector<8x32xf32> to vector<8x32xbf16>
    %cst_32 = arith.constant dense<0.000000e+00> : vector<8x128xf32>
    %170 = tpu.matmul %169, %1, %cst_32 {dimension_numbers = #tpu.dot_dimension_numbers<[1], [0], [0], [1], [0, 0, 1, 1], [], []>} : vector<8x32xbf16>, vector<32x128xbf16>, vector<8x128xf32> -> vector<8x128xf32>
    %171 = vector.broadcast %5 : vector<1x128xf32> to vector<8x128xf32>
    %172 = arith.addf %170, %171 : vector<8x128xf32>
    %173 = arith.truncf %150 : vector<8x32xf32> to vector<8x32xbf16>
    %cst_33 = arith.constant dense<0.000000e+00> : vector<8x128xf32>
    %174 = tpu.matmul %173, %3, %cst_33 {dimension_numbers = #tpu.dot_dimension_numbers<[1], [0], [0], [1], [0, 0, 1, 1], [], []>} : vector<8x32xbf16>, vector<32x128xbf16>, vector<8x128xf32> -> vector<8x128xf32>
    %175 = arith.addf %172, %174 : vector<8x128xf32>
    %176 = math.tanh %175 : vector<8x128xf32>
    %177 = vector.broadcast %6 : vector<1x128xf32> to vector<8x128xf32>
    %178 = arith.mulf %176, %177 : vector<8x128xf32>
    %179 = vector.broadcast %7 : vector<1x128xf32> to vector<8x128xf32>
    %180 = arith.addf %178, %179 : vector<8x128xf32>
    %181 = vector.extract_strided_slice %180 {offsets = [0, 0], sizes = [8, 32], strides = [1, 1]} : vector<8x128xf32> to vector<8x32xf32>
    %182 = vector.extract_strided_slice %180 {offsets = [0, 32], sizes = [8, 32], strides = [1, 1]} : vector<8x128xf32> to vector<8x32xf32>
    %183 = vector.extract_strided_slice %180 {offsets = [0, 64], sizes = [8, 32], strides = [1, 1]} : vector<8x128xf32> to vector<8x32xf32>
    %184 = vector.extract_strided_slice %180 {offsets = [0, 96], sizes = [8, 32], strides = [1, 1]} : vector<8x128xf32> to vector<8x32xf32>
    %185 = arith.mulf %182, %148 : vector<8x32xf32>
    %186 = arith.mulf %181, %183 : vector<8x32xf32>
    %187 = arith.addf %185, %186 : vector<8x32xf32>
    %188 = math.tanh %187 : vector<8x32xf32>
    %189 = arith.mulf %184, %188 : vector<8x32xf32>
    %190 = vector.extract_strided_slice %11 {offsets = [40, 0], sizes = [8, 128], strides = [1, 1]} : vector<64x128xf32> to vector<8x128xf32>
    %191 = arith.truncf %168 : vector<8x32xf32> to vector<8x32xbf16>
    %cst_34 = arith.constant dense<0.000000e+00> : vector<8x128xf32>
    %192 = tpu.matmul %191, %2, %cst_34 {dimension_numbers = #tpu.dot_dimension_numbers<[1], [0], [0], [1], [0, 0, 1, 1], [], []>} : vector<8x32xbf16>, vector<32x128xbf16>, vector<8x128xf32> -> vector<8x128xf32>
    %193 = arith.addf %190, %192 : vector<8x128xf32>
    %194 = math.tanh %193 : vector<8x128xf32>
    %195 = vector.broadcast %6 : vector<1x128xf32> to vector<8x128xf32>
    %196 = arith.mulf %194, %195 : vector<8x128xf32>
    %197 = vector.broadcast %7 : vector<1x128xf32> to vector<8x128xf32>
    %198 = arith.addf %196, %197 : vector<8x128xf32>
    %199 = vector.extract_strided_slice %198 {offsets = [0, 0], sizes = [8, 32], strides = [1, 1]} : vector<8x128xf32> to vector<8x32xf32>
    %200 = vector.extract_strided_slice %198 {offsets = [0, 32], sizes = [8, 32], strides = [1, 1]} : vector<8x128xf32> to vector<8x32xf32>
    %201 = vector.extract_strided_slice %198 {offsets = [0, 64], sizes = [8, 32], strides = [1, 1]} : vector<8x128xf32> to vector<8x32xf32>
    %202 = vector.extract_strided_slice %198 {offsets = [0, 96], sizes = [8, 32], strides = [1, 1]} : vector<8x128xf32> to vector<8x32xf32>
    %203 = arith.mulf %200, %166 : vector<8x32xf32>
    %204 = arith.mulf %199, %201 : vector<8x32xf32>
    %205 = arith.addf %203, %204 : vector<8x32xf32>
    %206 = math.tanh %205 : vector<8x32xf32>
    %207 = arith.mulf %202, %206 : vector<8x32xf32>
    %208 = arith.truncf %168 : vector<8x32xf32> to vector<8x32xbf16>
    %cst_35 = arith.constant dense<0.000000e+00> : vector<8x128xf32>
    %209 = tpu.matmul %208, %1, %cst_35 {dimension_numbers = #tpu.dot_dimension_numbers<[1], [0], [0], [1], [0, 0, 1, 1], [], []>} : vector<8x32xbf16>, vector<32x128xbf16>, vector<8x128xf32> -> vector<8x128xf32>
    %210 = vector.broadcast %5 : vector<1x128xf32> to vector<8x128xf32>
    %211 = arith.addf %209, %210 : vector<8x128xf32>
    %212 = arith.truncf %189 : vector<8x32xf32> to vector<8x32xbf16>
    %cst_36 = arith.constant dense<0.000000e+00> : vector<8x128xf32>
    %213 = tpu.matmul %212, %3, %cst_36 {dimension_numbers = #tpu.dot_dimension_numbers<[1], [0], [0], [1], [0, 0, 1, 1], [], []>} : vector<8x32xbf16>, vector<32x128xbf16>, vector<8x128xf32> -> vector<8x128xf32>
    %214 = arith.addf %211, %213 : vector<8x128xf32>
    %215 = math.tanh %214 : vector<8x128xf32>
    %216 = vector.broadcast %6 : vector<1x128xf32> to vector<8x128xf32>
    %217 = arith.mulf %215, %216 : vector<8x128xf32>
    %218 = vector.broadcast %7 : vector<1x128xf32> to vector<8x128xf32>
    %219 = arith.addf %217, %218 : vector<8x128xf32>
    %220 = vector.extract_strided_slice %219 {offsets = [0, 0], sizes = [8, 32], strides = [1, 1]} : vector<8x128xf32> to vector<8x32xf32>
    %221 = vector.extract_strided_slice %219 {offsets = [0, 32], sizes = [8, 32], strides = [1, 1]} : vector<8x128xf32> to vector<8x32xf32>
    %222 = vector.extract_strided_slice %219 {offsets = [0, 64], sizes = [8, 32], strides = [1, 1]} : vector<8x128xf32> to vector<8x32xf32>
    %223 = vector.extract_strided_slice %219 {offsets = [0, 96], sizes = [8, 32], strides = [1, 1]} : vector<8x128xf32> to vector<8x32xf32>
    %224 = arith.mulf %221, %187 : vector<8x32xf32>
    %225 = arith.mulf %220, %222 : vector<8x32xf32>
    %226 = arith.addf %224, %225 : vector<8x32xf32>
    %227 = math.tanh %226 : vector<8x32xf32>
    %228 = arith.mulf %223, %227 : vector<8x32xf32>
    %229 = vector.extract_strided_slice %11 {offsets = [48, 0], sizes = [8, 128], strides = [1, 1]} : vector<64x128xf32> to vector<8x128xf32>
    %230 = arith.truncf %207 : vector<8x32xf32> to vector<8x32xbf16>
    %cst_37 = arith.constant dense<0.000000e+00> : vector<8x128xf32>
    %231 = tpu.matmul %230, %2, %cst_37 {dimension_numbers = #tpu.dot_dimension_numbers<[1], [0], [0], [1], [0, 0, 1, 1], [], []>} : vector<8x32xbf16>, vector<32x128xbf16>, vector<8x128xf32> -> vector<8x128xf32>
    %232 = arith.addf %229, %231 : vector<8x128xf32>
    %233 = math.tanh %232 : vector<8x128xf32>
    %234 = vector.broadcast %6 : vector<1x128xf32> to vector<8x128xf32>
    %235 = arith.mulf %233, %234 : vector<8x128xf32>
    %236 = vector.broadcast %7 : vector<1x128xf32> to vector<8x128xf32>
    %237 = arith.addf %235, %236 : vector<8x128xf32>
    %238 = vector.extract_strided_slice %237 {offsets = [0, 0], sizes = [8, 32], strides = [1, 1]} : vector<8x128xf32> to vector<8x32xf32>
    %239 = vector.extract_strided_slice %237 {offsets = [0, 32], sizes = [8, 32], strides = [1, 1]} : vector<8x128xf32> to vector<8x32xf32>
    %240 = vector.extract_strided_slice %237 {offsets = [0, 64], sizes = [8, 32], strides = [1, 1]} : vector<8x128xf32> to vector<8x32xf32>
    %241 = vector.extract_strided_slice %237 {offsets = [0, 96], sizes = [8, 32], strides = [1, 1]} : vector<8x128xf32> to vector<8x32xf32>
    %242 = arith.mulf %239, %205 : vector<8x32xf32>
    %243 = arith.mulf %238, %240 : vector<8x32xf32>
    %244 = arith.addf %242, %243 : vector<8x32xf32>
    %245 = math.tanh %244 : vector<8x32xf32>
    %246 = arith.mulf %241, %245 : vector<8x32xf32>
    %247 = arith.truncf %207 : vector<8x32xf32> to vector<8x32xbf16>
    %cst_38 = arith.constant dense<0.000000e+00> : vector<8x128xf32>
    %248 = tpu.matmul %247, %1, %cst_38 {dimension_numbers = #tpu.dot_dimension_numbers<[1], [0], [0], [1], [0, 0, 1, 1], [], []>} : vector<8x32xbf16>, vector<32x128xbf16>, vector<8x128xf32> -> vector<8x128xf32>
    %249 = vector.broadcast %5 : vector<1x128xf32> to vector<8x128xf32>
    %250 = arith.addf %248, %249 : vector<8x128xf32>
    %251 = arith.truncf %228 : vector<8x32xf32> to vector<8x32xbf16>
    %cst_39 = arith.constant dense<0.000000e+00> : vector<8x128xf32>
    %252 = tpu.matmul %251, %3, %cst_39 {dimension_numbers = #tpu.dot_dimension_numbers<[1], [0], [0], [1], [0, 0, 1, 1], [], []>} : vector<8x32xbf16>, vector<32x128xbf16>, vector<8x128xf32> -> vector<8x128xf32>
    %253 = arith.addf %250, %252 : vector<8x128xf32>
    %254 = math.tanh %253 : vector<8x128xf32>
    %255 = vector.broadcast %6 : vector<1x128xf32> to vector<8x128xf32>
    %256 = arith.mulf %254, %255 : vector<8x128xf32>
    %257 = vector.broadcast %7 : vector<1x128xf32> to vector<8x128xf32>
    %258 = arith.addf %256, %257 : vector<8x128xf32>
    %259 = vector.extract_strided_slice %258 {offsets = [0, 0], sizes = [8, 32], strides = [1, 1]} : vector<8x128xf32> to vector<8x32xf32>
    %260 = vector.extract_strided_slice %258 {offsets = [0, 32], sizes = [8, 32], strides = [1, 1]} : vector<8x128xf32> to vector<8x32xf32>
    %261 = vector.extract_strided_slice %258 {offsets = [0, 64], sizes = [8, 32], strides = [1, 1]} : vector<8x128xf32> to vector<8x32xf32>
    %262 = vector.extract_strided_slice %258 {offsets = [0, 96], sizes = [8, 32], strides = [1, 1]} : vector<8x128xf32> to vector<8x32xf32>
    %263 = arith.mulf %260, %226 : vector<8x32xf32>
    %264 = arith.mulf %259, %261 : vector<8x32xf32>
    %265 = arith.addf %263, %264 : vector<8x32xf32>
    %266 = math.tanh %265 : vector<8x32xf32>
    %267 = arith.mulf %262, %266 : vector<8x32xf32>
    %268 = vector.extract_strided_slice %11 {offsets = [56, 0], sizes = [8, 128], strides = [1, 1]} : vector<64x128xf32> to vector<8x128xf32>
    %269 = arith.truncf %246 : vector<8x32xf32> to vector<8x32xbf16>
    %cst_40 = arith.constant dense<0.000000e+00> : vector<8x128xf32>
    %270 = tpu.matmul %269, %2, %cst_40 {dimension_numbers = #tpu.dot_dimension_numbers<[1], [0], [0], [1], [0, 0, 1, 1], [], []>} : vector<8x32xbf16>, vector<32x128xbf16>, vector<8x128xf32> -> vector<8x128xf32>
    %271 = arith.addf %268, %270 : vector<8x128xf32>
    %272 = math.tanh %271 : vector<8x128xf32>
    %273 = vector.broadcast %6 : vector<1x128xf32> to vector<8x128xf32>
    %274 = arith.mulf %272, %273 : vector<8x128xf32>
    %275 = vector.broadcast %7 : vector<1x128xf32> to vector<8x128xf32>
    %276 = arith.addf %274, %275 : vector<8x128xf32>
    %277 = vector.extract_strided_slice %276 {offsets = [0, 0], sizes = [8, 32], strides = [1, 1]} : vector<8x128xf32> to vector<8x32xf32>
    %278 = vector.extract_strided_slice %276 {offsets = [0, 32], sizes = [8, 32], strides = [1, 1]} : vector<8x128xf32> to vector<8x32xf32>
    %279 = vector.extract_strided_slice %276 {offsets = [0, 64], sizes = [8, 32], strides = [1, 1]} : vector<8x128xf32> to vector<8x32xf32>
    %280 = vector.extract_strided_slice %276 {offsets = [0, 96], sizes = [8, 32], strides = [1, 1]} : vector<8x128xf32> to vector<8x32xf32>
    %281 = arith.mulf %278, %244 : vector<8x32xf32>
    %282 = arith.mulf %277, %279 : vector<8x32xf32>
    %283 = arith.addf %281, %282 : vector<8x32xf32>
    %284 = math.tanh %283 : vector<8x32xf32>
    %285 = arith.mulf %280, %284 : vector<8x32xf32>
    %286 = arith.truncf %246 : vector<8x32xf32> to vector<8x32xbf16>
    %cst_41 = arith.constant dense<0.000000e+00> : vector<8x128xf32>
    %287 = tpu.matmul %286, %1, %cst_41 {dimension_numbers = #tpu.dot_dimension_numbers<[1], [0], [0], [1], [0, 0, 1, 1], [], []>} : vector<8x32xbf16>, vector<32x128xbf16>, vector<8x128xf32> -> vector<8x128xf32>
    %288 = vector.broadcast %5 : vector<1x128xf32> to vector<8x128xf32>
    %289 = arith.addf %287, %288 : vector<8x128xf32>
    %290 = arith.truncf %267 : vector<8x32xf32> to vector<8x32xbf16>
    %cst_42 = arith.constant dense<0.000000e+00> : vector<8x128xf32>
    %291 = tpu.matmul %290, %3, %cst_42 {dimension_numbers = #tpu.dot_dimension_numbers<[1], [0], [0], [1], [0, 0, 1, 1], [], []>} : vector<8x32xbf16>, vector<32x128xbf16>, vector<8x128xf32> -> vector<8x128xf32>
    %292 = arith.addf %289, %291 : vector<8x128xf32>
    %293 = math.tanh %292 : vector<8x128xf32>
    %294 = vector.broadcast %6 : vector<1x128xf32> to vector<8x128xf32>
    %295 = arith.mulf %293, %294 : vector<8x128xf32>
    %296 = vector.broadcast %7 : vector<1x128xf32> to vector<8x128xf32>
    %297 = arith.addf %295, %296 : vector<8x128xf32>
    %298 = vector.extract_strided_slice %297 {offsets = [0, 0], sizes = [8, 32], strides = [1, 1]} : vector<8x128xf32> to vector<8x32xf32>
    %299 = vector.extract_strided_slice %297 {offsets = [0, 32], sizes = [8, 32], strides = [1, 1]} : vector<8x128xf32> to vector<8x32xf32>
    %300 = vector.extract_strided_slice %297 {offsets = [0, 64], sizes = [8, 32], strides = [1, 1]} : vector<8x128xf32> to vector<8x32xf32>
    %301 = vector.extract_strided_slice %297 {offsets = [0, 96], sizes = [8, 32], strides = [1, 1]} : vector<8x128xf32> to vector<8x32xf32>
    %302 = arith.mulf %299, %265 : vector<8x32xf32>
    %303 = arith.mulf %298, %300 : vector<8x32xf32>
    %304 = arith.addf %302, %303 : vector<8x32xf32>
    %305 = math.tanh %304 : vector<8x32xf32>
    %306 = arith.mulf %301, %305 : vector<8x32xf32>
    %307 = arith.truncf %285 : vector<8x32xf32> to vector<8x32xbf16>
    %cst_43 = arith.constant dense<0.000000e+00> : vector<8x128xf32>
    %308 = tpu.matmul %307, %1, %cst_43 {dimension_numbers = #tpu.dot_dimension_numbers<[1], [0], [0], [1], [0, 0, 1, 1], [], []>} : vector<8x32xbf16>, vector<32x128xbf16>, vector<8x128xf32> -> vector<8x128xf32>
    %309 = vector.broadcast %5 : vector<1x128xf32> to vector<8x128xf32>
    %310 = arith.addf %308, %309 : vector<8x128xf32>
    %311 = arith.truncf %306 : vector<8x32xf32> to vector<8x32xbf16>
    %cst_44 = arith.constant dense<0.000000e+00> : vector<8x128xf32>
    %312 = tpu.matmul %311, %3, %cst_44 {dimension_numbers = #tpu.dot_dimension_numbers<[1], [0], [0], [1], [0, 0, 1, 1], [], []>} : vector<8x32xbf16>, vector<32x128xbf16>, vector<8x128xf32> -> vector<8x128xf32>
    %313 = arith.addf %310, %312 : vector<8x128xf32>
    %314 = math.tanh %313 : vector<8x128xf32>
    %315 = vector.broadcast %6 : vector<1x128xf32> to vector<8x128xf32>
    %316 = arith.mulf %314, %315 : vector<8x128xf32>
    %317 = vector.broadcast %7 : vector<1x128xf32> to vector<8x128xf32>
    %318 = arith.addf %316, %317 : vector<8x128xf32>
    %319 = vector.extract_strided_slice %318 {offsets = [0, 0], sizes = [8, 32], strides = [1, 1]} : vector<8x128xf32> to vector<8x32xf32>
    %320 = vector.extract_strided_slice %318 {offsets = [0, 32], sizes = [8, 32], strides = [1, 1]} : vector<8x128xf32> to vector<8x32xf32>
    %321 = vector.extract_strided_slice %318 {offsets = [0, 64], sizes = [8, 32], strides = [1, 1]} : vector<8x128xf32> to vector<8x32xf32>
    %322 = vector.extract_strided_slice %318 {offsets = [0, 96], sizes = [8, 32], strides = [1, 1]} : vector<8x128xf32> to vector<8x32xf32>
    %323 = arith.mulf %320, %304 : vector<8x32xf32>
    %324 = arith.mulf %319, %321 : vector<8x32xf32>
    %325 = arith.addf %323, %324 : vector<8x32xf32>
    %326 = math.tanh %325 : vector<8x32xf32>
    %327 = arith.mulf %322, %326 : vector<8x32xf32>
    %c0_45 = arith.constant 0 : index
    %c0_46 = arith.constant 0 : index
    %c0_47 = arith.constant 0 : index
    %328 = vector.load %arg12[%c0_45, %c0_46, %c0_47] : memref<2x8x32xf32, #tpu.memory_space<vmem>>, vector<1x8x32xf32>
    %329 = vector.shape_cast %328 : vector<1x8x32xf32> to vector<8x32xf32>
    %330 = vector.shape_cast %285 : vector<8x32xf32> to vector<1x8x32xf32>
    tpu.vector_store %arg12[%c0_45, %c0_46, %c0_47], %330 {strides = array<i32>} : memref<2x8x32xf32, #tpu.memory_space<vmem>>, vector<1x8x32xf32>,
    %c0_48 = arith.constant 0 : index
    %c0_49 = arith.constant 0 : index
    %c0_50 = arith.constant 0 : index
    %331 = vector.load %arg13[%c0_48, %c0_49, %c0_50] : memref<2x8x32xf32, #tpu.memory_space<vmem>>, vector<1x8x32xf32>
    %332 = vector.shape_cast %331 : vector<1x8x32xf32> to vector<8x32xf32>
    %333 = vector.shape_cast %283 : vector<8x32xf32> to vector<1x8x32xf32>
    tpu.vector_store %arg13[%c0_48, %c0_49, %c0_50], %333 {strides = array<i32>} : memref<2x8x32xf32, #tpu.memory_space<vmem>>, vector<1x8x32xf32>,
    %c1 = arith.constant 1 : index
    %c0_51 = arith.constant 0 : index
    %c0_52 = arith.constant 0 : index
    %334 = vector.load %arg12[%c1, %c0_51, %c0_52] : memref<2x8x32xf32, #tpu.memory_space<vmem>>, vector<1x8x32xf32>
    %335 = vector.shape_cast %334 : vector<1x8x32xf32> to vector<8x32xf32>
    %336 = vector.shape_cast %327 : vector<8x32xf32> to vector<1x8x32xf32>
    tpu.vector_store %arg12[%c1, %c0_51, %c0_52], %336 {strides = array<i32>} : memref<2x8x32xf32, #tpu.memory_space<vmem>>, vector<1x8x32xf32>,
    %c1_53 = arith.constant 1 : index
    %c0_54 = arith.constant 0 : index
    %c0_55 = arith.constant 0 : index
    %337 = vector.load %arg13[%c1_53, %c0_54, %c0_55] : memref<2x8x32xf32, #tpu.memory_space<vmem>>, vector<1x8x32xf32>
    %338 = vector.shape_cast %337 : vector<1x8x32xf32> to vector<8x32xf32>
    %339 = vector.shape_cast %325 : vector<8x32xf32> to vector<1x8x32xf32>
    tpu.vector_store %arg13[%c1_53, %c0_54, %c0_55], %339 {strides = array<i32>} : memref<2x8x32xf32, #tpu.memory_space<vmem>>, vector<1x8x32xf32>,
    %340 = arith.truncf %327 : vector<8x32xf32> to vector<8x32xbf16>
    %c0_56 = arith.constant 0 : index
    %c0_57 = arith.constant 0 : index
    %341 = vector.load %arg9[%c0_56, %c0_57] : memref<32x4xbf16, #tpu.memory_space<vmem>>, vector<32x4xbf16>
    %cst_58 = arith.constant dense<0.000000e+00> : vector<8x4xf32>
    %342 = tpu.matmul %340, %341, %cst_58 {dimension_numbers = #tpu.dot_dimension_numbers<[1], [0], [0], [1], [0, 0, 1, 1], [], []>} : vector<8x32xbf16>, vector<32x4xbf16>, vector<8x4xf32> -> vector<8x4xf32>
    %c0_59 = arith.constant 0 : index
    %c0_60 = arith.constant 0 : index
    %343 = vector.load %arg10[%c0_59, %c0_60] : memref<1x4xf32, #tpu.memory_space<vmem>>, vector<1x4xf32>
    %344 = vector.broadcast %343 : vector<1x4xf32> to vector<8x4xf32>
    %345 = arith.addf %342, %344 : vector<8x4xf32>
    %c0_61 = arith.constant 0 : index
    %c0_62 = arith.constant 0 : index
    %346 = vector.load %arg11[%c0_61, %c0_62] : memref<8x4xf32, #tpu.memory_space<vmem>>, vector<8x4xf32>
    tpu.vector_store %arg11[%c0_61, %c0_62], %345 {strides = array<i32>} : memref<8x4xf32, #tpu.memory_space<vmem>>, vector<8x4xf32>,
    return
  }
}

</mosaic_0001>

<bundles_post_ra>
// kernel: lstm_model_forward.1
= control target key start
LH: loop header
LB: loop body
LE: loop exit
PB: predicated region body
PF: predicated region fallthrough
CT: control target
= control target key end

     0   :  { %19 = vsyncpa [#allocation3], 0  ;;  %vm99_vm0 = vcmask 130048   ;;  %s1636_s0 = inlined_call_operand.vmem [shape: bf16[64,16], index: 0, kind: input, shape index: {}]   ;;  %s1637_s1 = inlined_call_operand.vmem [shape: bf16[16,128], index: 1, kind: input, shape index: {}]   ;;  %s1638_s2 = inlined_call_operand.vmem [shape: bf16[32,128], index: 2, kind: input, shape index: {}]   ;;  %s1639_s3 = inlined_call_operand.vmem [shape: f32[1,128], index: 3, kind: input, shape index: {}]   ;;  %s1640_s4 = inlined_call_operand.vmem [shape: bf16[32,128], index: 4, kind: input, shape index: {}]   ;;  %s1641_s5 = inlined_call_operand.vmem [shape: bf16[32,128], index: 5, kind: input, shape index: {}]   ;;  %s1642_s6 = inlined_call_operand.vmem [shape: f32[1,128], index: 6, kind: input, shape index: {}]   ;;  %s1643_s7 = inlined_call_operand.vmem [shape: f32[1,128], index: 7, kind: input, shape index: {}]   ;;  %s1644_s8 = inlined_call_operand.vmem [shape: f32[1,128], index: 8, kind: input, shape index: {}]   ;;  %s1645_s9 = inlined_call_operand.vmem [shape: bf16[32,4], index: 9, kind: input, shape index: {}]   ;;  %s1646_s10 = inlined_call_operand.vmem [shape: f32[1,4], index: 10, kind: input, shape index: {}]   ;;  %s1647_s11 = inlined_call_operand.vmem [shape: f32[8,4], index: 11, kind: output, shape index: {0}]   ;;  %s1648_s12 = inlined_call_operand.hbm [shape: f32[2,8,32], index: 12, kind: output, shape index: {1}]   ;;  %s1649_s13 = inlined_call_operand.hbm [shape: f32[2,8,32], index: 13, kind: output, shape index: {2}]  }
   0x1   :  { %v1126_v0 = vld [vmem:[%s1637_s1] sm:$0xff]  ;;  %v1352_v1 = vld [vmem:[%s1638_s2 + $0x8] sm:$0xff] }
   0x2   :  { %v1133_v2 = vld [vmem:[%s1636_s0] sm:$0xff]  ;;  %119 = vmatpush.bf16.msra.mxu0 %v1126_v0  ;;  %163 = vmatpush.bf16.msra.mxu1 %v1352_v1 }
   0x3   :  { %v1360_v3 = vld [vmem:[%s1638_s2] sm:$0xff]  ;;  %210 = vmatpush.bf16.msra.mxu2 %v1352_v1 }
   0x4   :  { %20 = vsyncpa [#allocation5], 0  ;;  %v1268_v4 = vmov 0   ;;  %v1372_v5 = vld [vmem:[%s1639_s3] ss:$0 sm:$0xff]  ;;  %s1269_s3 = smov 64  }
   0x5   :  { %1067 = vmatmul.msk.bf16.vlgmr.msra.gmra.mxu0 %vm99_vm0, %v1133_v2  ;;  %v1378_v10 = vld [vmem:[%s1643_s7] ss:$0 sm:$0xff]  ;;  %s1270_s20 = smov 32   ;;  %v1396_v22 = vld [vmem:[%s1640_s4 + $0x8] sm:$0xff]  ;;  %vm153_vm1 = vcmask 261120   ;;  %s1272_s17 = smov [#allocation2]  }
   0x6   :  { %164 = vmatpush.bf16.msra.mxu1 %v1360_v3  ;;  %v1383_v12 = vld [vmem:[%s1644_s8] ss:$0 sm:$0xff]  ;;  %259 = vmatpush.bf16.msra.mxu3 %v1396_v22  ;;  %v1411_v27 = vld [vmem:[%s1641_s5 + $0x8] sm:$0xff]  ;;  %s1013_s18 = sshll.u32 %s1272_s17, 4  ;;  %s1273_s7 = smov [#allocation4]   ;;  %vm1005_vm2 = vcmask 31744   ;;  %s1014_s18 = int_to_ptr.vmem [resolvable:$true] %s1013_s18 }
   0x7   :  { %211 = vmatpush.bf16.msra.mxu2 %v1360_v3  ;;  %v1402_v23 = vld [vmem:[%s1640_s4] sm:$0xff]  ;;  %569 = vmatpush.bf16.msrb.mxu0 %v1411_v27  ;;  %v1134_v63 = vld [vmem:[%s1636_s0 + $0x8] sm:$0xff]  ;;  %s1026_s8 = sshll.u32 %s1273_s7, 4  ;;  %s1274_s23 = smov 128   ;;  %s1027_s8 = int_to_ptr.vmem [resolvable:$true] %s1026_s8 }
   0x8   :  { %v1417_v28 = vld [vmem:[%s1641_s5] sm:$0xff]  ;;  %s1275_s24 = smov 8  }
   0x9   :  { %165 = vmatmul.bf16.vlgmr.msra.gmra.mxu1 %v1268_v4  ;;  %v1437_v33 = vld [vmem:[%s1642_s6] ss:$0 sm:$0xff] }
   0xa   :  { %260 = vmatpush.bf16.msra.mxu3 %v1402_v23  ;;  %284 = vmatpush.bf16.msrb.mxu1 %v1411_v27 }
   0xb   :  { %325 = vmatpush.bf16.msrb.mxu2 %v1352_v1  ;;  %570 = vmatpush.bf16.msrb.mxu0 %v1417_v28 }
   0xe   :  { %359 = vmatpush.bf16.msrb.mxu3 %v1396_v22  ;;  %285 = vmatpush.bf16.msrb.mxu1 %v1417_v28 }
   0xf   :  { %326 = vmatpush.bf16.msrb.mxu2 %v1360_v3  ;;  %705 = vmatpush.bf16.msra.mxu0 %v1352_v1 }
  0x12   :  { %360 = vmatpush.bf16.msrb.mxu3 %v1402_v23  ;;  %379 = vmatpush.bf16.msra.mxu1 %v1411_v27 }
  0x13   :  { %706 = vmatpush.bf16.msra.mxu0 %v1360_v3 }
  0x15   :  { %1068 = vmatmul.msk.bf16.gmra.mxu0 %vm99_vm0, %v1134_v63 }
  0x16   :  { %380 = vmatpush.bf16.msra.mxu1 %v1417_v28 }
  0x19   :  { %286 = vmatmul.bf16.vlgmr.msrb.gmra.mxu1 %v1268_v4 }
  0x1a   :  { %474 = vmatpush.bf16.msrb.mxu1 %v1411_v27 }
  0x1e   :  { %475 = vmatpush.bf16.msrb.mxu1 %v1417_v28 }
  0x82   :  { %v121_v6 = vpop.f32.mrf.mxu0 }
  0x83   :  { %v122_v7 = vadd.f32 %v1372_v5, %v121_v6 }
  0x86   :  { %v166_v8 = vpop.f32.mrf.mxu1 }
  0x87   :  { %v170_v9 = vadd.f32 %v166_v8, %v122_v7 }
  0x89   :  { %1152 = vtanh.f32 %v170_v9 }
  0x8a   :  { %v123_v32 = vpop.f32.mrf.mxu0 }
  0x8b   :  { %v124_v34 = vadd.f32 %v1372_v5, %v123_v32 }
  0x8e   :  { %v168_v11 = vpop.f32.mrf.mxu1 }
  0x8f   :  { %v1153_v13 = vpop.eup %1152 }
  0x90   :  { %v175_v14 = vmul.f32 %v1153_v13, %v1378_v10 }
  0x92   :  { %v179_v15 = vadd.f32 %v1383_v12, %v175_v14  ;;  %v126_v8 = vpop.f32.mrf.mxu0 }
  0x93   :  { %v127_v9 = vadd.f32 %v1372_v5, %v126_v8 }
  0x94   :  { %182 = vrot.lane.b32.xlu0 %v179_v15, %s1269_s3  ;;  %v180_v18 = vmul.f32 0.0, %v179_v15 }
  0x96   :  { %v287_v30 = vpop.f32.mrf.mxu1 }
  0x9e   :  { %v289_v31 = vpop.f32.mrf.mxu1 }
 0x106   :  { %v183_v16 = vpop.permute.xlu0 %182 }
 0x107   :  { %v185_v17 = vmul.f32 %v183_v16, %v179_v15 }
 0x109   :  { %187 = vrot.lane.b32.xlu0 %v185_v17, %s1270_s20 }
 0x17b   :  { %v188_v19 = vpop.permute.xlu0 %187 }
 0x17c   :  { %v1389_v20 = vadd.f32 %v188_v19, %v180_v18 }
 0x17e   :  { %1154 = vtanh.f32 %v1389_v20 }
 0x184   :  { %v1155_v21 = vpop.eup %1154 }
 0x185   :  { %193 = vrot.lane.b32.xlu1 %v1155_v21, %s1269_s3 }
 0x1f7   :  { %v194_v24 = vpop.permute.xlu1 %193 }
 0x1f8   :  { %v196_v25 = vmul.f32 %v194_v24, %v179_v15 }
 0x1fa   :  { %v197_v26 = vpack.c.bf16 %v196_v25, %v196_v25 }
 0x1fc   :  { %199 = vrot.lane.b32.xlu1 %v197_v26, %s1270_s20 }
 0x26e   :  { %v200_v29 = vpop.permute.xlu1 %199 }
 0x26f   :  { %1079 = vmatmul.msk.bf16.vlgmr.msra.gmra.mxu2 %vm153_vm1, %v200_v29  ;;  %1088 = vmatmul.msk.bf16.vlgmr.msra.gmra.mxu3 %vm153_vm1, %v200_v29 }
 0x270   :  { %420 = vmatpush.bf16.msra.mxu2 %v1352_v1  ;;  %454 = vmatpush.bf16.msra.mxu3 %v1396_v22 }
 0x274   :  { %421 = vmatpush.bf16.msra.mxu2 %v1360_v3  ;;  %455 = vmatpush.bf16.msra.mxu3 %v1402_v23 }
 0x2f2   :  { %v213_v35 = vpop.f32.mrf.mxu2  ;;  %v262_v36 = vpop.f32.mrf.mxu3 }
 0x2f3   :  { %v217_v37 = vadd.f32 %v213_v35, %v124_v34  ;;  %v263_v38 = vadd.f32 %v1437_v33, %v262_v36 }
 0x2f5   :  { %1156 = vtanh.f32 %v217_v37  ;;  %v291_v39 = vadd.f32 %v287_v30, %v263_v38 }
 0x2f7   :  { %1158 = vtanh.f32 %v291_v39 }
 0x2fa   :  { %v215_v40 = vpop.f32.mrf.mxu2  ;;  %v264_v41 = vpop.f32.mrf.mxu3 }
 0x2fb   :  { %v1157_v42 = vpop.eup %1156 }
 0x2fc   :  { %v219_v43 = vmul.f32 %v1157_v42, %v1378_v10 }
 0x2fd   :  { %v1159_v45 = vpop.eup %1158 }
 0x2fe   :  { %v220_v44 = vadd.f32 %v1383_v12, %v219_v43  ;;  %v293_v46 = vmul.f32 %v1159_v45, %v1378_v10 }
 0x300   :  { %223 = vrot.lane.b32.xlu2 %v220_v44, %s1269_s3  ;;  %v294_v47 = vadd.f32 %v1383_v12, %v293_v46  ;;  %v221_v52 = vmul.f32 %v220_v44, %v1389_v20 }
 0x302   :  { %v295_v55 = vmul.f32 0.0, %v294_v47 }
 0x308   :  { %297 = vrot.lane.b32.xlu2 %v294_v47, %s1269_s3 }
 0x35a   :  { %v224_v48 = vpop.permute.xlu2 %223 }
 0x35b   :  { %v226_v49 = vmul.f32 %v224_v48, %v220_v44 }
 0x35d   :  { %228 = vrot.lane.b32.xlu0 %v226_v49, %s1270_s20 }
 0x362   :  { %v298_v50 = vpop.permute.xlu2 %297 }
 0x363   :  { %v300_v51 = vmul.f32 %v298_v50, %v294_v47 }
 0x365   :  { %302 = vrot.lane.b32.xlu1 %v300_v51, %s1270_s20 }
 0x3cf   :  { %v229_v53 = vpop.permute.xlu0 %228 }
 0x3d0   :  { %v231_v54 = vadd.f32 %v229_v53, %v221_v52  ;;  %v128_v52 = vpop.f32.mrf.mxu0 }
 0x3d2   :  { %1160 = vtanh.f32 %v231_v54 }
 0x3d7   :  { %v303_v56 = vpop.permute.xlu1 %302 }
 0x3d8   :  { %v1161_v57 = vpop.eup %1160  ;;  %v305_v58 = vadd.f32 %v303_v56, %v295_v55 }
 0x3d9   :  { %234 = vrot.lane.b32.xlu2 %v1161_v57, %s1269_s3 }
 0x3da   :  { %1162 = vtanh.f32 %v305_v58 }
 0x3e0   :  { %v1163_v59 = vpop.eup %1162 }
 0x3e1   :  { %308 = vrot.lane.b32.xlu0 %v1163_v59, %s1269_s3 }
 0x433   :  { %v235_v60 = vpop.permute.xlu2 %234 }
 0x434   :  { %v237_v61 = vmul.f32 %v235_v60, %v220_v44 }
 0x436   :  { %v312_v62 = vpack.c.bf16 %v237_v61, %v237_v61 }
 0x438   :  { %314 = vrot.lane.b32.xlu1 %v312_v62, %s1270_s20 }
 0x453   :  { %v309_v0 = vpop.permute.xlu0 %308 }
 0x454   :  { %v311_v2 = vmul.f32 %v309_v0, %v294_v47 }
 0x456   :  { %v366_v4 = vpack.c.bf16 %v311_v2, %v311_v2 }
 0x458   :  { %368 = vrot.lane.b32.xlu2 %v366_v4, %s1270_s20 }
 0x4aa   :  { %v315_v6 = vpop.permute.xlu1 %314 }
 0x4ab   :  { %1097 = vmatmul.msk.bf16.vlgmr.msrb.gmra.mxu2 %vm153_vm1, %v315_v6  ;;  %1098 = vmatmul.msk.bf16.vlgmr.msrb.gmra.mxu3 %vm153_vm1, %v315_v6 }
 0x4ac   :  { %515 = vmatpush.bf16.msrb.mxu2 %v1352_v1  ;;  %549 = vmatpush.bf16.msrb.mxu3 %v1396_v22 }
 0x4b0   :  { %516 = vmatpush.bf16.msrb.mxu2 %v1360_v3  ;;  %550 = vmatpush.bf16.msrb.mxu3 %v1402_v23 }
 0x4b2   :  { %v369_v7 = vpop.permute.xlu2 %368 }
 0x4b3   :  { %1099 = vmatmul.msk.bf16.vlgmr.msra.gmra.mxu1 %vm153_vm1, %v369_v7 }
 0x4b4   :  { %610 = vmatpush.bf16.msra.mxu1 %v1352_v1 }
 0x4b8   :  { %611 = vmatpush.bf16.msra.mxu1 %v1360_v3 }
 0x52e   :  { %v328_v11 = vpop.f32.mrf.mxu2  ;;  %v362_v13 = vpop.f32.mrf.mxu3 }
 0x52f   :  { %v332_v14 = vadd.f32 %v328_v11, %v127_v9  ;;  %v363_v15 = vadd.f32 %v1437_v33, %v362_v13 }
 0x530   :  { %v382_v16 = vpop.f32.mrf.mxu1 }
 0x531   :  { %1164 = vtanh.f32 %v332_v14  ;;  %v386_v17 = vadd.f32 %v382_v16, %v363_v15 }
 0x533   :  { %1166 = vtanh.f32 %v386_v17 }
 0x536   :  { %v330_v18 = vpop.f32.mrf.mxu2  ;;  %v364_v19 = vpop.f32.mrf.mxu3 }
 0x537   :  { %v1165_v20 = vpop.eup %1164 }
 0x538   :  { %v334_v21 = vmul.f32 %v1165_v20, %v1378_v10  ;;  %v384_v24 = vpop.f32.mrf.mxu1 }
 0x539   :  { %v1167_v25 = vpop.eup %1166  ;;  %v1135_v24 = vld [vmem:[%s1636_s0 + $0x10] sm:$0xff] }
 0x53a   :  { %v388_v26 = vmul.f32 %v1167_v25, %v1378_v10  ;;  %v335_v29 = vadd.f32 %v1383_v12, %v334_v21  ;;  %1069 = vmatmul.msk.bf16.gmra.mxu0 %vm99_vm0, %v1135_v24 }
 0x53c   :  { %338 = vrot.lane.b32.xlu0 %v335_v29, %s1269_s3  ;;  %v389_v30 = vadd.f32 %v1383_v12, %v388_v26  ;;  %v336_v36 = vmul.f32 %v335_v29, %v231_v54  ;;  %v129_v54 = vadd.f32 %v1372_v5, %v128_v52 }
 0x53e   :  { %392 = vrot.lane.b32.xlu1 %v389_v30, %s1269_s3  ;;  %v390_v40 = vmul.f32 %v389_v30, %v305_v58 }
 0x5ae   :  { %v339_v31 = vpop.permute.xlu0 %338 }
 0x5af   :  { %v341_v32 = vmul.f32 %v339_v31, %v335_v29 }
 0x5b0   :  { %v393_v34 = vpop.permute.xlu1 %392 }
 0x5b1   :  { %v395_v35 = vmul.f32 %v393_v34, %v389_v30  ;;  %343 = vrot.lane.b32.xlu2 %v341_v32, %s1270_s20  ;;  %v1136_v34 = vld [vmem:[%s1636_s0 + $0x18] sm:$0xff]  ;;  %s1271_s0 = smov 96  }
 0x5b2   :  { %1070 = vmatmul.msk.bf16.gmra.mxu0 %vm99_vm0, %v1136_v34 }
 0x5b3   :  { %397 = vrot.lane.b32.xlu0 %v395_v35, %s1270_s20 }
 0x60b   :  { %v344_v37 = vpop.permute.xlu2 %343 }
 0x60c   :  { %v346_v38 = vadd.f32 %v344_v37, %v336_v36  ;;  %v131_v37 = vpop.f32.mrf.mxu0 }
 0x60e   :  { %1168 = vtanh.f32 %v346_v38 }
 0x614   :  { %v1169_v39 = vpop.eup %1168 }
 0x615   :  { %349 = vrot.lane.b32.xlu1 %v1169_v39, %s1269_s3  ;;  %v132_v39 = vadd.f32 %v1372_v5, %v131_v37 }
 0x625   :  { %v398_v41 = vpop.permute.xlu0 %397 }
 0x626   :  { %v400_v42 = vadd.f32 %v398_v41, %v390_v40 }
 0x628   :  { %1170 = vtanh.f32 %v400_v42 }
 0x62e   :  { %v1171_v43 = vpop.eup %1170 }
 0x62f   :  { %403 = vrot.lane.b32.xlu2 %v1171_v43, %s1269_s3 }
 0x687   :  { %v350_v44 = vpop.permute.xlu1 %349 }
 0x688   :  { %v352_v45 = vmul.f32 %v350_v44, %v335_v29 }
 0x689   :  { %v404_v46 = vpop.permute.xlu2 %403 }
 0x68a   :  { %v407_v47 = vpack.c.bf16 %v352_v45, %v352_v45  ;;  %v406_v48 = vmul.f32 %v404_v46, %v389_v30 }
 0x68c   :  { %v461_v49 = vpack.c.bf16 %v406_v48, %v406_v48  ;;  %409 = vrot.lane.b32.xlu0 %v407_v47, %s1270_s20 }
 0x68e   :  { %463 = vrot.lane.b32.xlu1 %v461_v49, %s1270_s20 }
 0x6fe   :  { %v410_v50 = vpop.permute.xlu0 %409 }
 0x6ff   :  { %1100 = vmatmul.msk.bf16.vlgmr.msra.gmra.mxu2 %vm153_vm1, %v410_v50  ;;  %1101 = vmatmul.msk.bf16.vlgmr.msra.gmra.mxu3 %vm153_vm1, %v410_v50 }
 0x700   :  { %v464_v51 = vpop.permute.xlu1 %463  ;;  %644 = vmatpush.bf16.msra.mxu2 %v1396_v22  ;;  %664 = vmatpush.bf16.msra.mxu3 %v1411_v27 }
 0x701   :  { %1102 = vmatmul.msk.bf16.vlgmr.msrb.gmra.mxu1 %vm153_vm1, %v464_v51 }
 0x702   :  { %739 = vmatpush.bf16.msrb.mxu1 %v1396_v22 }
 0x704   :  { %645 = vmatpush.bf16.msra.mxu2 %v1402_v23  ;;  %665 = vmatpush.bf16.msra.mxu3 %v1417_v28 }
 0x706   :  { %740 = vmatpush.bf16.msrb.mxu1 %v1402_v23 }
 0x77e   :  { %v477_v53 = vpop.f32.mrf.mxu1 }
 0x782   :  { %v423_v55 = vpop.f32.mrf.mxu2  ;;  %v457_v56 = vpop.f32.mrf.mxu3 }
 0x783   :  { %v427_v57 = vadd.f32 %v423_v55, %v129_v54  ;;  %v458_v58 = vadd.f32 %v1437_v33, %v457_v56 }
 0x785   :  { %1172 = vtanh.f32 %v427_v57  ;;  %v481_v59 = vadd.f32 %v477_v53, %v458_v58 }
 0x786   :  { %v479_v60 = vpop.f32.mrf.mxu1 }
 0x787   :  { %1174 = vtanh.f32 %v481_v59 }
 0x78a   :  { %v425_v61 = vpop.f32.mrf.mxu2  ;;  %v459_v62 = vpop.f32.mrf.mxu3 }
 0x78b   :  { %v1173_v63 = vpop.eup %1172 }
 0x78c   :  { %v429_v0 = vmul.f32 %v1173_v63, %v1378_v10 }
 0x78d   :  { %v1175_v2 = vpop.eup %1174 }
 0x78e   :  { %v430_v4 = vadd.f32 %v1383_v12, %v429_v0  ;;  %v483_v6 = vmul.f32 %v1175_v2, %v1378_v10 }
 0x790   :  { %433 = vrot.lane.b32.xlu2 %v430_v4, %s1269_s3  ;;  %v484_v7 = vadd.f32 %v1383_v12, %v483_v6  ;;  %v431_v14 = vmul.f32 %v430_v4, %v346_v38  ;;  %v133_v38 = vpop.f32.mrf.mxu0 }
 0x792   :  { %487 = vrot.lane.b32.xlu0 %v484_v7, %s1269_s3  ;;  %v485_v17 = vmul.f32 %v484_v7, %v400_v42 }
 0x798   :  { %v1525_v43 = vpop.f32.mrf.mxu0 }
 0x7a0   :  { %v1528_v46 = vpop.f32.mrf.mxu0 }
 0x7ea   :  { %v434_v8 = vpop.permute.xlu2 %433 }
 0x7eb   :  { %v436_v9 = vmul.f32 %v434_v8, %v430_v4 }
 0x7ed   :  { %438 = vrot.lane.b32.xlu1 %v436_v9, %s1270_s20 }
 0x804   :  { %v488_v11 = vpop.permute.xlu0 %487 }
 0x805   :  { %v490_v13 = vmul.f32 %v488_v11, %v484_v7 }
 0x807   :  { %492 = vrot.lane.b32.xlu2 %v490_v13, %s1270_s20 }
 0x85f   :  { %v439_v15 = vpop.permute.xlu1 %438 }
 0x860   :  { %v1500_v16 = vadd.f32 %v439_v15, %v431_v14 }
 0x861   :  { %v493_v18 = vpop.permute.xlu2 %492 }
 0x862   :  { %1176 = vtanh.f32 %v1500_v16  ;;  %v495_v19 = vadd.f32 %v493_v18, %v485_v17 }
 0x864   :  { %1178 = vtanh.f32 %v495_v19 }
 0x868   :  { %v1177_v20 = vpop.eup %1176 }
 0x869   :  { %444 = vrot.lane.b32.xlu0 %v1177_v20, %s1269_s3 }
 0x86a   :  { %v1179_v21 = vpop.eup %1178 }
 0x86b   :  { %498 = vrot.lane.b32.xlu1 %v1179_v21, %s1269_s3 }
 0x8db   :  { %v445_v25 = vpop.permute.xlu0 %444 }
 0x8dc   :  { %v447_v26 = vmul.f32 %v445_v25, %v430_v4 }
 0x8dd   :  { %v499_v29 = vpop.permute.xlu1 %498 }
 0x8de   :  { %v502_v30 = vpack.c.bf16 %v447_v26, %v447_v26  ;;  %v501_v31 = vmul.f32 %v499_v29, %v484_v7 }
 0x8e0   :  { %v556_v32 = vpack.c.bf16 %v501_v31, %v501_v31  ;;  %504 = vrot.lane.b32.xlu2 %v502_v30, %s1270_s20 }
 0x8e2   :  { %558 = vrot.lane.b32.xlu0 %v556_v32, %s1270_s20 }
 0x93a   :  { %v505_v35 = vpop.permute.xlu2 %504 }
 0x93b   :  { %1103 = vmatmul.msk.bf16.vlgmr.msrb.gmra.mxu2 %vm153_vm1, %v505_v35  ;;  %1104 = vmatmul.msk.bf16.vlgmr.msrb.gmra.mxu3 %vm153_vm1, %v505_v35 }
 0x93c   :  { %759 = vmatpush.bf16.msrb.mxu2 %v1411_v27  ;;  %800 = vmatpush.bf16.msrb.mxu3 %v1352_v1 }
 0x940   :  { %760 = vmatpush.bf16.msrb.mxu2 %v1417_v28  ;;  %801 = vmatpush.bf16.msrb.mxu3 %v1360_v3 }
 0x954   :  { %v559_v36 = vpop.permute.xlu0 %558 }
 0x955   :  { %1105 = vmatmul.msk.bf16.vlgmr.msrb.gmra.mxu0 %vm153_vm1, %v559_v36 }
 0x956   :  { %834 = vmatpush.bf16.msrb.mxu0 %v1396_v22 }
 0x95a   :  { %835 = vmatpush.bf16.msrb.mxu0 %v1402_v23 }
 0x9be   :  { %v518_v40 = vpop.f32.mrf.mxu2  ;;  %v552_v41 = vpop.f32.mrf.mxu3 }
 0x9bf   :  { %v522_v42 = vadd.f32 %v518_v40, %v132_v39  ;;  %v553_v48 = vadd.f32 %v1437_v33, %v552_v41 }
 0x9c1   :  { %1180 = vtanh.f32 %v522_v42 }
 0x9c6   :  { %v520_v1 = vpop.f32.mrf.mxu2  ;;  %v554_v44 = vpop.f32.mrf.mxu3 }
 0x9c7   :  { %v1181_v3 = vpop.eup %1180 }
 0x9c8   :  { %v524_v45 = vmul.f32 %v1181_v3, %v1378_v10 }
 0x9ca   :  { %v525_v47 = vadd.f32 %v1383_v12, %v524_v45 }
 0x9cc   :  { %528 = vrot.lane.b32.xlu1 %v525_v47, %s1269_s3  ;;  %v526_v62 = vmul.f32 %v525_v47, %v1500_v16  ;;  %v134_v16 = vadd.f32 %v1372_v5, %v133_v38 }
 0x9d2   :  { %v572_v49 = vpop.f32.mrf.mxu0 }
 0x9d3   :  { %v576_v50 = vadd.f32 %v572_v49, %v553_v48 }
 0x9d5   :  { %1182 = vtanh.f32 %v576_v50 }
 0x9da   :  { %v574_v51 = vpop.f32.mrf.mxu0 }
 0x9db   :  { %v1183_v52 = vpop.eup %1182 }
 0x9dc   :  { %v578_v53 = vmul.f32 %v1183_v52, %v1378_v10 }
 0x9de   :  { %v579_v54 = vadd.f32 %v1383_v12, %v578_v53  ;;  %v137_v53 = vadd.f32 %v1372_v5, %v1525_v43 }
 0x9e0   :  { %582 = vrot.lane.b32.xlu2 %v579_v54, %s1269_s3  ;;  %v580_v59 = vmul.f32 %v579_v54, %v495_v19 }
 0xa3a   :  { %v583_v55 = vpop.permute.xlu2 %582 }
 0xa3b   :  { %v585_v56 = vmul.f32 %v583_v55, %v579_v54 }
 0xa3d   :  { %587 = vrot.lane.b32.xlu1 %v585_v56, %s1270_s20 }
 0xa3e   :  { %v529_v57 = vpop.permute.xlu1 %528 }
 0xa3f   :  { %v531_v58 = vmul.f32 %v529_v57, %v525_v47 }
 0xa41   :  { %533 = vrot.lane.b32.xlu0 %v531_v58, %s1270_s20 }
 0xaaf   :  { %v588_v60 = vpop.permute.xlu1 %587 }
 0xab0   :  { %v590_v61 = vadd.f32 %v588_v60, %v580_v59 }
 0xab2   :  { %1184 = vtanh.f32 %v590_v61 }
 0xab3   :  { %v534_v63 = vpop.permute.xlu0 %533 }
 0xab4   :  { %v536_v0 = vadd.f32 %v534_v63, %v526_v62 }
 0xab6   :  { %1186 = vtanh.f32 %v536_v0 }
 0xab8   :  { %v1185_v2 = vpop.eup %1184 }
 0xab9   :  { %593 = vrot.lane.b32.xlu0 %v1185_v2, %s1269_s3 }
 0xabc   :  { %v1187_v4 = vpop.eup %1186 }
 0xabd   :  { %539 = vrot.lane.b32.xlu2 %v1187_v4, %s1269_s3 }
 0xb17   :  { %v540_v6 = vpop.permute.xlu2 %539 }
 0xb18   :  { %v542_v7 = vmul.f32 %v540_v6, %v525_v47 }
 0xb1a   :  { %v597_v8 = vpack.c.bf16 %v542_v7, %v542_v7 }
 0xb1c   :  { %599 = vrot.lane.b32.xlu1 %v597_v8, %s1270_s20 }
 0xb2b   :  { %v594_v9 = vpop.permute.xlu0 %593 }
 0xb2c   :  { %v596_v11 = vmul.f32 %v594_v9, %v579_v54 }
 0xb2e   :  { %v651_v13 = vpack.c.bf16 %v596_v11, %v596_v11 }
 0xb30   :  { %653 = vrot.lane.b32.xlu2 %v651_v13, %s1270_s20 }
 0xb8a   :  { %v654_v14 = vpop.permute.xlu2 %653 }
 0xb8b   :  { %1108 = vmatmul.msk.bf16.vlgmr.msra.gmra.mxu3 %vm153_vm1, %v654_v14 }
 0xb8c   :  { %915 = vmatpush.bf16.msra.mxu3 %v1411_v27 }
 0xb8e   :  { %v600_v15 = vpop.permute.xlu1 %599 }
 0xb8f   :  { %1106 = vmatmul.msk.bf16.vlgmr.msra.gmra.mxu1 %vm153_vm1, %v600_v15  ;;  %1107 = vmatmul.msk.bf16.vlgmr.msra.gmra.mxu2 %vm153_vm1, %v600_v15 }
 0xb90   :  { %854 = vmatpush.bf16.msra.mxu1 %v1411_v27  ;;  %895 = vmatpush.bf16.msra.mxu2 %v1396_v22 }
 0xb91   :  { %916 = vmatpush.bf16.msra.mxu3 %v1417_v28 }
 0xb94   :  { %855 = vmatpush.bf16.msra.mxu1 %v1417_v28  ;;  %896 = vmatpush.bf16.msra.mxu2 %v1402_v23 }
 0xc0c   :  { %v613_v17 = vpop.f32.mrf.mxu1 }
 0xc0d   :  { %v617_v18 = vadd.f32 %v613_v17, %v134_v16 }
 0xc0e   :  { %v667_v19 = vpop.f32.mrf.mxu3 }
 0xc0f   :  { %1188 = vtanh.f32 %v617_v18 }
 0xc12   :  { %v647_v20 = vpop.f32.mrf.mxu2 }
 0xc13   :  { %v648_v21 = vadd.f32 %v1437_v33, %v647_v20 }
 0xc14   :  { %v615_v24 = vpop.f32.mrf.mxu1 }
 0xc15   :  { %v1189_v25 = vpop.eup %1188  ;;  %v671_v27 = vadd.f32 %v667_v19, %v648_v21 }
 0xc16   :  { %v619_v22 = vmul.f32 %v1189_v25, %v1378_v10  ;;  %v669_v26 = vpop.f32.mrf.mxu3 }
 0xc17   :  { %1190 = vtanh.f32 %v671_v27 }
 0xc18   :  { %v620_v28 = vadd.f32 %v1383_v12, %v619_v22 }
 0xc1a   :  { %623 = vrot.lane.b32.xlu0 %v620_v28, %s1269_s3  ;;  %v649_v23 = vpop.f32.mrf.mxu2  ;;  %v621_v37 = vmul.f32 %v620_v28, %v536_v0 }
 0xc1d   :  { %v1191_v29 = vpop.eup %1190 }
 0xc1e   :  { %v673_v30 = vmul.f32 %v1191_v29, %v1378_v10 }
 0xc20   :  { %v674_v31 = vadd.f32 %v1383_v12, %v673_v30  ;;  %v139_v30 = vadd.f32 %v1372_v5, %v1528_v46 }
 0xc22   :  { %677 = vrot.lane.b32.xlu1 %v674_v31, %s1269_s3  ;;  %v675_v41 = vmul.f32 %v674_v31, %v590_v61 }
 0xc8c   :  { %v624_v32 = vpop.permute.xlu0 %623 }
 0xc8d   :  { %v626_v34 = vmul.f32 %v624_v32, %v620_v28 }
 0xc8f   :  { %628 = vrot.lane.b32.xlu2 %v626_v34, %s1270_s20 }
 0xc94   :  { %v678_v35 = vpop.permute.xlu1 %677 }
 0xc95   :  { %v680_v36 = vmul.f32 %v678_v35, %v674_v31 }
 0xc97   :  { %682 = vrot.lane.b32.xlu0 %v680_v36, %s1270_s20 }
 0xce9   :  { %v629_v38 = vpop.permute.xlu2 %628 }
 0xcea   :  { %v631_v39 = vadd.f32 %v629_v38, %v621_v37 }
 0xcec   :  { %1192 = vtanh.f32 %v631_v39 }
 0xcf2   :  { %v1193_v40 = vpop.eup %1192 }
 0xcf3   :  { %634 = vrot.lane.b32.xlu1 %v1193_v40, %s1269_s3 }
 0xd09   :  { %v683_v42 = vpop.permute.xlu0 %682 }
 0xd0a   :  { %v685_v1 = vadd.f32 %v683_v42, %v675_v41 }
 0xd0c   :  { %1194 = vtanh.f32 %v685_v1 }
 0xd12   :  { %v1195_v44 = vpop.eup %1194 }
 0xd13   :  { %688 = vrot.lane.b32.xlu2 %v1195_v44, %s1269_s3 }
 0xd65   :  { %v635_v3 = vpop.permute.xlu1 %634 }
 0xd66   :  { %v637_v45 = vmul.f32 %v635_v3, %v620_v28 }
 0xd68   :  { %v692_v47 = vpack.c.bf16 %v637_v45, %v637_v45 }
 0xd6a   :  { %694 = vrot.lane.b32.xlu0 %v692_v47, %s1270_s20 }
 0xd6d   :  { %v689_v48 = vpop.permute.xlu2 %688 }
 0xd6e   :  { %v691_v49 = vmul.f32 %v689_v48, %v674_v31 }
 0xd70   :  { %v746_v50 = vpack.c.bf16 %v691_v49, %v691_v49 }
 0xd72   :  { %748 = vrot.lane.b32.xlu1 %v746_v50, %s1270_s20 }
 0xddc   :  { %v695_v51 = vpop.permute.xlu0 %694 }
 0xddd   :  { %1109 = vmatmul.msk.bf16.vlgmr.msra.gmra.mxu0 %vm153_vm1, %v695_v51  ;;  %1110 = vmatmul.msk.bf16.vlgmr.msrb.gmra.mxu1 %vm153_vm1, %v695_v51 }
 0xde4   :  { %v749_v52 = vpop.permute.xlu1 %748 }
 0xde5   :  { %1111 = vmatmul.msk.bf16.vlgmr.msrb.gmra.mxu2 %vm153_vm1, %v749_v52 }
 0xe5a   :  { %v708_v54 = vpop.f32.mrf.mxu0  ;;  %v742_v55 = vpop.f32.mrf.mxu1 }
 0xe5b   :  { %v712_v56 = vadd.f32 %v708_v54, %v137_v53  ;;  %v743_v62 = vadd.f32 %v1437_v33, %v742_v55 }
 0xe5d   :  { %1196 = vtanh.f32 %v712_v56 }
 0xe62   :  { %v710_v57 = vpop.f32.mrf.mxu0  ;;  %v744_v58 = vpop.f32.mrf.mxu1 }
 0xe63   :  { %v1197_v59 = vpop.eup %1196 }
 0xe64   :  { %v714_v60 = vmul.f32 %v1197_v59, %v1378_v10 }
 0xe66   :  { %v715_v61 = vadd.f32 %v1383_v12, %v714_v60 }
 0xe68   :  { %718 = vrot.lane.b32.xlu2 %v715_v61, %s1269_s3  ;;  %v762_v63 = vpop.f32.mrf.mxu2  ;;  %v716_v13 = vmul.f32 %v715_v61, %v631_v39 }
 0xe69   :  { %v766_v0 = vadd.f32 %v762_v63, %v743_v62 }
 0xe6b   :  { %1198 = vtanh.f32 %v766_v0 }
 0xe70   :  { %v764_v2 = vpop.f32.mrf.mxu2 }
 0xe71   :  { %v1199_v43 = vpop.eup %1198 }
 0xe72   :  { %v768_v4 = vmul.f32 %v1199_v43, %v1378_v10 }
 0xe74   :  { %v769_v6 = vadd.f32 %v1383_v12, %v768_v4 }
 0xe76   :  { %772 = vrot.lane.b32.xlu0 %v769_v6, %s1269_s3  ;;  %v770_v17 = vmul.f32 %v769_v6, %v685_v1 }
 0xec2   :  { %v719_v7 = vpop.permute.xlu2 %718 }
 0xec3   :  { %v721_v8 = vmul.f32 %v719_v7, %v715_v61 }
 0xec5   :  { %723 = vrot.lane.b32.xlu1 %v721_v8, %s1270_s20 }
 0xee8   :  { %v773_v9 = vpop.permute.xlu0 %772 }
 0xee9   :  { %v775_v11 = vmul.f32 %v773_v9, %v769_v6 }
 0xeeb   :  { %777 = vrot.lane.b32.xlu2 %v775_v11, %s1270_s20 }
 0xf37   :  { %v724_v14 = vpop.permute.xlu1 %723 }
 0xf38   :  { %v726_v15 = vadd.f32 %v724_v14, %v716_v13 }
 0xf3a   :  { %1200 = vtanh.f32 %v726_v15 }
 0xf40   :  { %v1201_v16 = vpop.eup %1200 }
 0xf41   :  { %729 = vrot.lane.b32.xlu0 %v1201_v16, %s1269_s3 }
 0xf45   :  { %v778_v18 = vpop.permute.xlu2 %777 }
 0xf46   :  { %v780_v19 = vadd.f32 %v778_v18, %v770_v17 }
 0xf48   :  { %1202 = vtanh.f32 %v780_v19 }
 0xf4e   :  { %v1203_v20 = vpop.eup %1202 }
 0xf4f   :  { %783 = vrot.lane.b32.xlu1 %v1203_v20, %s1269_s3 }
 0xfb3   :  { %v730_v21 = vpop.permute.xlu0 %729 }
 0xfb4   :  { %v732_v24 = vmul.f32 %v730_v21, %v715_v61 }
 0xfb6   :  { %v787_v25 = vpack.c.bf16 %v732_v24, %v732_v24 }
 0xfb8   :  { %789 = vrot.lane.b32.xlu2 %v787_v25, %s1270_s20 }
 0xfc1   :  { %v784_v27 = vpop.permute.xlu1 %783 }
 0xfc2   :  { %v786_v22 = vmul.f32 %v784_v27, %v769_v6 }
 0xfc4   :  { %v841_v26 = vpack.c.bf16 %v786_v22, %v786_v22 }
 0xfc6   :  { %843 = vrot.lane.b32.xlu0 %v841_v26, %s1270_s20  ;;  %v1151_v26 = vld [vmem:[%s1646_s10] ss:$0 sm:$0xff] }
0x1012   :  { %v790_v28 = vpop.permute.xlu2 %789 }
0x1013   :  { %1112 = vmatmul.msk.bf16.vlgmr.msrb.gmra.mxu3 %vm153_vm1, %v790_v28  ;;  %1113 = vmatmul.msk.bf16.vlgmr.msrb.gmra.mxu0 %vm153_vm1, %v790_v28 }
0x1038   :  { %v844_v23 = vpop.permute.xlu0 %843 }
0x1039   :  { %1114 = vmatmul.msk.bf16.vlgmr.msra.gmra.mxu1 %vm153_vm1, %v844_v23 }
0x1090   :  { %v837_v29 = vpop.f32.mrf.mxu0 }
0x1091   :  { %v838_v39 = vadd.f32 %v1437_v33, %v837_v29 }
0x1096   :  { %v803_v31 = vpop.f32.mrf.mxu3 }
0x1097   :  { %v807_v32 = vadd.f32 %v803_v31, %v139_v30 }
0x1098   :  { %v839_v34 = vpop.f32.mrf.mxu0 }
0x1099   :  { %1204 = vtanh.f32 %v807_v32 }
0x109e   :  { %v805_v35 = vpop.f32.mrf.mxu3 }
0x109f   :  { %v1205_v36 = vpop.eup %1204 }
0x10a0   :  { %v809_v37 = vmul.f32 %v1205_v36, %v1378_v10 }
0x10a2   :  { %v810_v38 = vadd.f32 %v1383_v12, %v809_v37 }
0x10a4   :  { %813 = vrot.lane.b32.xlu1 %v810_v38, %s1269_s3  ;;  %v811_v48 = vmul.f32 %v810_v38, %v726_v15 }
0x10b6   :  { %v857_v40 = vpop.f32.mrf.mxu1 }
0x10b7   :  { %v861_v41 = vadd.f32 %v857_v40, %v838_v39 }
0x10b9   :  { %1206 = vtanh.f32 %v861_v41 }
0x10be   :  { %v859_v42 = vpop.f32.mrf.mxu1 }
0x10bf   :  { %v1207_v1 = vpop.eup %1206 }
0x10c0   :  { %v863_v5 = vmul.f32 %v1207_v1, %v1378_v10 }
0x10c2   :  { %v864_v46 = vadd.f32 %v1383_v12, %v863_v5 }
0x10c4   :  { %867 = vrot.lane.b32.xlu2 %v864_v46, %s1269_s3  ;;  %v865_v51 = vmul.f32 %v864_v46, %v780_v19 }
0x1116   :  { %v814_v44 = vpop.permute.xlu1 %813 }
0x1117   :  { %v816_v3 = vmul.f32 %v814_v44, %v810_v38 }
0x1119   :  { %818 = vrot.lane.b32.xlu0 %v816_v3, %s1270_s20 }
0x111e   :  { %v868_v45 = vpop.permute.xlu2 %867 }
0x111f   :  { %v870_v47 = vmul.f32 %v868_v45, %v864_v46 }
0x1121   :  { %872 = vrot.lane.b32.xlu1 %v870_v47, %s1270_s20 }
0x118b   :  { %v819_v49 = vpop.permute.xlu0 %818 }
0x118c   :  { %v821_v50 = vadd.f32 %v819_v49, %v811_v48 }
0x118e   :  { %1208 = vtanh.f32 %v821_v50 }
0x1193   :  { %v873_v52 = vpop.permute.xlu1 %872 }
0x1194   :  { %v1209_v53 = vpop.eup %1208  ;;  %v875_v54 = vadd.f32 %v873_v52, %v865_v51 }
0x1195   :  { %824 = vrot.lane.b32.xlu2 %v1209_v53, %s1269_s3 }
0x1196   :  { %1210 = vtanh.f32 %v875_v54 }
0x119c   :  { %v1211_v55 = vpop.eup %1210 }
0x119d   :  { %878 = vrot.lane.b32.xlu0 %v1211_v55, %s1269_s3 }
0x11ef   :  { %v825_v56 = vpop.permute.xlu2 %824 }
0x11f0   :  { %v827_v57 = vmul.f32 %v825_v56, %v810_v38 }
0x11f2   :  { %v882_v58 = vpack.c.bf16 %v827_v57, %v827_v57 }
0x11f4   :  { %884 = vrot.lane.b32.xlu1 %v882_v58, %s1270_s20 }
0x120f   :  { %v879_v59 = vpop.permute.xlu0 %878 }
0x1210   :  { %v881_v60 = vmul.f32 %v879_v59, %v864_v46 }
0x1212   :  { %v902_v61 = vpack.c.bf16 %v881_v60, %v881_v60 }
0x1214   :  { %904 = vrot.lane.b32.xlu2 %v902_v61, %s1270_s20 }
0x1266   :  { %v885_v62 = vpop.permute.xlu1 %884 }
0x1267   :  { %1115 = vmatmul.msk.bf16.vlgmr.msra.gmra.mxu2 %vm153_vm1, %v885_v62 }
0x126e   :  { %v905_v63 = vpop.permute.xlu2 %904 }
0x126f   :  { %1116 = vmatmul.msk.bf16.vlgmr.msra.gmra.mxu3 %vm153_vm1, %v905_v63 }
0x12ea   :  { %v898_v0 = vpop.f32.mrf.mxu2 }
0x12eb   :  { %v899_v2 = vadd.f32 %v1437_v33, %v898_v0 }
0x12f2   :  { %v900_v43 = vpop.f32.mrf.mxu2  ;;  %v918_v4 = vpop.f32.mrf.mxu3 }
0x12f3   :  { %v922_v6 = vadd.f32 %v918_v4, %v899_v2 }
0x12f5   :  { %1212 = vtanh.f32 %v922_v6 }
0x12fa   :  { %v920_v7 = vpop.f32.mrf.mxu3 }
0x12fb   :  { %v1213_v8 = vpop.eup %1212 }
0x12fc   :  { %v924_v9 = vmul.f32 %v1213_v8, %v1378_v10  ;;  %v1138_v10 = vld [vmem:[%s1645_s9 + $0x8] sm:$0xff] }
0x12fd   :  { %998 = vmatpush.bf16.msra.mxu0 %v1138_v10 }
0x12fe   :  { %v925_v11 = vadd.f32 %v1383_v12, %v924_v9  ;;  %v1137_v12 = vld [vmem:[%s1645_s9] sm:$0xff] }
0x1300   :  { %928 = vrot.lane.b32.xlu0 %v925_v11, %s1269_s3  ;;  %v926_v15 = vmul.f32 %v925_v11, %v875_v54 }
0x1301   :  { %999 = vmatpush.bf16.msra.mxu0 %v1137_v12 }
0x1372   :  { %v929_v13 = vpop.permute.xlu0 %928 }
0x1373   :  { %v931_v14 = vmul.f32 %v929_v13, %v925_v11 }
0x1375   :  { %933 = vrot.lane.b32.xlu1 %v931_v14, %s1270_s20 }
0x137d   :  { %944 = vrot.lane.b32.xlu1 %v827_v57, %s1270_s20 }
0x13e7   :  { %v934_v33 = vpop.permute.xlu1 %933 }
0x13e8   :  { %v936_v16 = vadd.f32 %v934_v33, %v926_v15 }
0x13ea   :  { %1214 = vtanh.f32 %v936_v16  ;;  %960 = vrot.lane.b32.xlu1 %v936_v16, %s1271_s0 }
0x13ef   :  { %v945_v17 = vpop.permute.xlu1 %944 }
0x13f0   :  { %v1215_v18 = vpop.eup %1214  ;;  %947 = vst.msk [vmem:[#allocation2] sm:$0xff] %vm153_vm1, %v945_v17 }
0x13f1   :  { %939 = vrot.lane.b32.xlu2 %v1215_v18, %s1269_s3  ;;  %s1015_s3 = sshll.u32 %s1648_s12, 4  ;;  %s1016_s3 = int_to_ptr.hbm [resolvable:$true] %s1015_s3 }
0x13f9   :  { %949 = vrot.lane.b32.xlu2 %v821_v50, %s1271_s0 }
0x144b   :  { %v940_v19 = vpop.permute.xlu2 %939 }
0x144c   :  { %v942_v20 = vmul.f32 %v940_v19, %v925_v11 }
0x144e   :  { %v965_v21 = vpack.c.bf16 %v942_v20, %v942_v20 }
0x1450   :  { %975 = vrot.lane.b32.xlu0 %v965_v21, %s1270_s20 }
0x1453   :  { %v950_v24 = vpop.permute.xlu2 %949 }
0x1454   :  { %952 = vst.msk [vmem:[#allocation4] sm:$0xff] %vm153_vm1, %v950_v24 }
0x1458   :  { %954 = vrot.lane.b32.xlu0 %v942_v20, %s1270_s20  ;;  %s1028_s20 = sshll.u32 %s1649_s13, 4  ;;  %s1029_s20 = int_to_ptr.hbm [resolvable:$true] %s1028_s20 }
0x145c   :  { %v961_v25 = vpop.permute.xlu1 %960 }
0x145d   :  { %964 = vst.msk [vmem:[#allocation4 + $0x8] sm:$0xff] %vm153_vm1, %v961_v25 }
0x145e   :  { %1034 = dma.vmem_to_hbm [thread:$0]  %s1027_s8, 256, %s1029_s20, [#allocation5], %s1274_s23, %s1274_s23, %s1275_s24  }
0x14c2   :  { %v976_v27 = vpop.permute.xlu0 %975 }
0x14c3   :  { %1125 = vmatmul.msk.bf16.vlgmr.msra.gmra.mxu0 %vm153_vm1, %v976_v27 }
0x14ca   :  { %v955_v22 = vpop.permute.xlu0 %954 }
0x14cb   :  { %958 = vst.msk [vmem:[#allocation2 + $0x8] sm:$0xff] %vm153_vm1, %v955_v22 }
0x14cc   :  { %1021 = dma.vmem_to_hbm [thread:$0]  %s1014_s18, 256, %s1016_s3, [#allocation3], %s1274_s23, %s1274_s23, %s1275_s24  }
0x1540   :  { %v1001_v28 = vpop.f32.mrf.mxu0 }
0x1541   :  { %v1002_v23 = vadd.f32 %v1151_v26, %v1001_v28 }
0x1543   :  { %1006 = vst.msk [vmem:[%s1647_s11] sm:$0xff] %vm1005_vm2, %v1002_v23 }
0x1548   :  { %v1003_v29 = vpop.f32.mrf.mxu0 }
0x1549   :  { %1264 = dma.done.wait [#allocation3], 256  }
0x154a   :  { %1265 = vsyncadd [#allocation3], 4294967040 }
0x154b   :  { %1266 = dma.done.wait [#allocation5], 256  }
0x154c   :  { %1267 = vsyncadd [#allocation5], 4294967040 }
0x154d   :  { %1045 = vsyncpa [#allocation3], 1 }
0x154e   :  { %1046 = vsyncpa [#allocation5], 1 }

</bundles_post_ra>
